<compile_context>
chip_gen: v7x
topology: tpu7x:2x2x1
jax: 0.10.0
libtpu: 0.0.40
codegen_flags: <defaults>
</compile_context>

<pallas_src>
import functools

import jax
import jax.numpy as jnp
from jax import lax
from jax.experimental import pallas as pl
from jax.experimental.pallas import tpu as pltpu  # noqa: F401  (kept for TPU-specific tuning hooks)


C_PAD = 128  # lane-dense classifier width; true num_classes is sliced in the wrapper

# row layout of the packed f32 "vec" operand (must match init_params)
_R_VPROJ_B, _R_VLN_G, _R_VLN_B = 0, 1, 2
_R_TPROJ_B, _R_TLN_G, _R_TLN_B = 3, 4, 5
_R_DAV_B = 6
_R_APROJ_B, _R_ALN_G, _R_ALN_B = 7, 8, 9
_R_BQKV = 10
_R_CLS_B = 11
_N_VEC_ROWS = 12


# ----------------------------------------------------------------------------
# Fused forward kernel
# ----------------------------------------------------------------------------

def _eao_forward_kernel(video_ref, text_ref, audio_ref,
                        proj_w_ref, dav_w_ref, fw_ref, vec_ref,
                        out_ref):
    """Entire EverythingAtOnce forward in one kernel (working set << VMEM)."""
    f32, bf16 = jnp.float32, jnp.bfloat16
    B, Nv, Vdim = video_ref.shape
    _, Nt, Tdim = text_ref.shape
    _, Na, FK = audio_ref.shape
    D = proj_w_ref.shape[1]
    Adim = dav_w_ref.shape[1]
    CP = C_PAD

    def vrow(r, width):
        # one packed (1, width) f32 parameter row (broadcasts over M)
        return vec_ref[r:r + 1, 0:width]

    def layernorm(x, g_row, b_row):
        # matches nn.LayerNorm(embed_dim, eps=1e-06) from the reference module
        mu = jnp.mean(x, axis=-1, keepdims=True)
        xc = x - mu
        var = jnp.mean(xc * xc, axis=-1, keepdims=True)
        return xc * lax.rsqrt(var + 1e-6) * vrow(g_row, D) + vrow(b_row, D)

    # ---- token extraction: projection + LayerNorm fused, batch folded into M ----
    v_tok = layernorm(
        jnp.dot(video_ref[...].reshape(B * Nv, Vdim).astype(bf16),
                proj_w_ref[0:Vdim, :], preferred_element_type=f32)
        + vrow(_R_VPROJ_B, D), _R_VLN_G, _R_VLN_B)                          # (B*Nv, D)
    t_tok = layernorm(
        jnp.dot(text_ref[...].reshape(B * Nt, Tdim).astype(bf16),
                proj_w_ref[Vdim:Vdim + Tdim, :], preferred_element_type=f32)
        + vrow(_R_TPROJ_B, D), _R_TLN_G, _R_TLN_B)                          # (B*Nt, D)
    a_feat = (jnp.dot(audio_ref[...].reshape(B * Na, FK).astype(bf16),
                      dav_w_ref[...], preferred_element_type=f32)
              + vrow(_R_DAV_B, Adim))                                       # (B*Na, Adim)
    a_tok = layernorm(
        jnp.dot(a_feat.astype(bf16),
                proj_w_ref[Vdim + Tdim:Vdim + Tdim + Adim, :],
                preferred_element_type=f32)
        + vrow(_R_APROJ_B, D), _R_ALN_G, _R_ALN_B)                          # (B*Na, D)

    # ---- ONE packed QKV matmul over all tokens of all modalities ----
    tok_all = jnp.concatenate([v_tok, t_tok, a_tok], axis=0).astype(bf16)   # (M_all, D)
    h_all = (jnp.dot(tok_all, fw_ref[0:D, 0:3 * D], preferred_element_type=f32)
             + vrow(_R_BQKV, 3 * D))                                        # (M_all, 3D) f32

    Mv, Mt = B * Nv, B * Nt
    h_v = h_all[0:Mv].reshape(B, Nv, 3 * D)
    h_t = h_all[Mv:Mv + Mt].reshape(B, Nt, 3 * D)
    h_a = h_all[Mv + Mt:].reshape(B, Na, 3 * D)

    def split_qkv(h):
        # q stays f32 so the cross-modal query concats below are (8,128)-tile
        # aligned; k/v are cast to bf16 once here (each used in exactly one group).
        return (h[:, :, 0:D],
                h[:, :, D:2 * D].astype(bf16),
                h[:, :, 2 * D:3 * D].astype(bf16))

    q_v, k_v, v_v = split_qkv(h_v)
    q_t, k_t, v_t = split_qkv(h_t)
    q_a, k_a, v_a = split_qkv(h_a)

    def attend(q, k, v):
        # q already carries the 1/sqrt(D) scale (folded into W_qkv's Q block at init)
        s = jnp.einsum('bqd,bkd->bqk', q.astype(bf16), k, preferred_element_type=f32)
        s = s - jnp.max(s, axis=-1, keepdims=True)
        p = jnp.exp(s)
        p = p * pl.reciprocal(jnp.sum(p, axis=-1, keepdims=True), approx=True)
        return jnp.einsum('bqk,bkd->bqd', p.astype(bf16), v, preferred_element_type=f32)

    # ---- 6 cross-modal attentions merged into 3 shared-key groups ----
    # key/value = video, queries = [audio ; text]
    ctx = attend(jnp.concatenate([q_a, q_t], axis=1), k_v, v_v)
    va = jnp.mean(ctx[:, 0:Na], axis=1)            # fusion(key=video, query=audio), pooled
    vt = jnp.mean(ctx[:, Na:Na + Nt], axis=1)      # fusion(key=video, query=text),  pooled
    # key/value = audio, queries = [video ; text]
    ctx = attend(jnp.concatenate([q_v, q_t], axis=1), k_a, v_a)
    av = jnp.mean(ctx[:, 0:Nv], axis=1)
    at = jnp.mean(ctx[:, Nv:Nv + Nt], axis=1)
    # key/value = text, queries = [audio ; video]
    ctx = attend(jnp.concatenate([q_a, q_v], axis=1), k_t, v_t)
    ta = jnp.mean(ctx[:, 0:Na], axis=1)
    tv = jnp.mean(ctx[:, Na:Na + Nv], axis=1)

    # ---- classifiers (attention output projection Wo/bo pre-folded offline) ----
    clsw = fw_ref[D:3 * D, 0:3 * CP]               # (2D, 3*C_PAD) bf16; head h = lane block h

    def head(m1, m2, h):
        x = jnp.concatenate([m1, m2], axis=-1).astype(bf16)                 # (B, 2D)
        return jnp.dot(x, clsw[:, h * CP:(h + 1) * CP], preferred_element_type=f32)

    logits = jnp.concatenate([head(va, av, 0),     # vav
                              head(at, ta, 1),     # ata
                              head(tv, vt, 2)],    # tvt
                             axis=-1) + vrow(_R_CLS_B, 3 * CP)              # (B, 3*C_PAD)
    out_ref[...] = logits                           # single lane-dense store


# ----------------------------------------------------------------------------
# Wrapper
# ----------------------------------------------------------------------------

@functools.partial(jax.jit, static_argnames=("num_classes",))
def everything_at_once_forward(video, audio, nframes, text, category, params,
                               *, num_classes):
    # TODO(synk): nframes/category are unused — the reference masks ragged
    # audio/text before attention & pooling; this path assumes full-length inputs.
    del nframes, category
    B, F, T = audio.shape
    K = params["davenet_w"].shape[0] // F           # conv kernel (== stride), static
    Ta = T // K
    # TODO(synk): full DAVEnet is a deep 2-D conv stack; modeled as one strided
    # conv with kernel == stride, so the im2col is a pure layout reshape.
    patches = audio.reshape(B, F, Ta, K).transpose(0, 2, 1, 3).reshape(B, Ta, F * K)

    out = pl.pallas_call(
        _eao_forward_kernel,
        out_shape=jax.ShapeDtypeStruct((B, 3 * C_PAD), jnp.float32),
    )(video, text, patches,
      params["proj_w"], params["davenet_w"], params["fusion_cls_w"], params["vec"])

    return (out[:, 0:num_classes],
            out[:, C_PAD:C_PAD + num_classes],
            out[:, 2 * C_PAD:2 * C_PAD + num_classes])


# ----------------------------------------------------------------------------
# Deterministic parameter init (+ offline folding / packing)
# ----------------------------------------------------------------------------

def init_params(key, D, video_dim, text_dim, freq, kernel, audio_dim, num_classes):
    assert num_classes <= C_PAD
    f32, bf16 = jnp.float32, jnp.bfloat16
    ks = iter(jax.random.split(key, 16))

    def w(shape):
        return jax.random.normal(next(ks), shape, f32) * 0.02

    # raw f32 parameters (simplified DAVEnet: one strided conv, kernel == stride)
    vproj_w, tproj_w = w((video_dim, D)), w((text_dim, D))
    dav_w, aproj_w = w((freq * kernel, audio_dim)), w((audio_dim, D))
    wqkv, wo = w((D, 3 * D)), w((D, D))
    cls_w = [w((2 * D, num_classes)) for _ in range(3)]
    vproj_b = tproj_b = aproj_b = jnp.zeros((D,), f32)
    dav_b = jnp.zeros((audio_dim,), f32)
    bqkv = jnp.zeros((3 * D,), f32)
    bo = jnp.zeros((D,), f32)
    cls_b = [jnp.zeros((num_classes,), f32) for _ in range(3)]
    ln_g, ln_b = jnp.ones((D,), f32), jnp.zeros((D,), f32)

    # (a) fold 1/sqrt(D) attention scale into the Q block of W_qkv / b_qkv (exact)
    scale = 1.0 / float(D) ** 0.5
    wqkv = wqkv.at[:, :D].multiply(scale)
    bqkv = bqkv.at[:D].multiply(scale)

    # (b) fold the linear attention output projection into the classifier heads:
    #     (ctx1@Wo+bo)@W1 + (ctx2@Wo+bo)@W2 + b
    #   = ctx1@(Wo@W1) + ctx2@(Wo@W2) + (b + bo@(W1+W2))        -- exact in f32
    blocks, biases = [], []
    for h in range(3):
        w1, w2 = cls_w[h][:D], cls_w[h][D:]
        blk = jnp.zeros((2 * D, C_PAD), f32)
        blk = blk.at[:D, :num_classes].set(wo @ w1).at[D:, :num_classes].set(wo @ w2)
        blocks.append(blk)
        biases.append(jnp.zeros((C_PAD,), f32).at[:num_classes]
                      .set(cls_b[h] + bo @ (w1 + w2)))
    cls_w_fused = jnp.concatenate(blocks, axis=1)        # (2D, 3*C_PAD)
    cls_b_fused = jnp.concatenate(biases, axis=0)        # (3*C_PAD,)

    # (c) pack everything into 4 operands (fewer blocking DMAs at kernel start)
    proj_w = jnp.concatenate([vproj_w, tproj_w, aproj_w], axis=0).astype(bf16)

    w_fuse = -(-max(3 * D, 3 * C_PAD) // 128) * 128

    def padc(x):
        return jnp.zeros((x.shape[0], w_fuse), f32).at[:, :x.shape[1]].set(x)

    fusion_cls_w = jnp.concatenate([padc(wqkv), padc(cls_w_fused)], axis=0).astype(bf16)

    w_vec = -(-max(D, audio_dim, 3 * D, 3 * C_PAD) // 128) * 128

    def row(v):
        return jnp.zeros((1, w_vec), f32).at[0, :v.shape[0]].set(v)

    vec = jnp.concatenate([
        row(vproj_b), row(ln_g), row(ln_b),      # 0-2 : video proj bias, video LN gamma/beta
        row(tproj_b), row(ln_g), row(ln_b),      # 3-5 : text
        row(dav_b),                              # 6   : davenet conv bias
        row(aproj_b), row(ln_g), row(ln_b),      # 7-9 : audio
        row(bqkv),                               # 10  : qkv bias (Q block pre-scaled)
        row(cls_b_fused)], axis=0)               # 11  : fused classifier biases
    assert vec.shape[0] == _N_VEC_ROWS

    return {"proj_w": proj_w,
            "davenet_w": dav_w.astype(bf16),
            "fusion_cls_w": fusion_cls_w,
            "vec": vec}


# ----------------------------------------------------------------------------
# Main
# ----------------------------------------------------------------------------

if __name__ == "__main__":
    B = 2
    D = 128             # embed_dim (scaled down from 1024)
    Nv, Nt = 8, 16      # video / text token counts
    Vdim, Tdim = 256, 64    # video_embed_dim / text_embed_dim (scaled down)
    F, T = 32, 32       # audio spectrogram: (freq, time)
    KER = 4             # simplified DAVEnet conv kernel == stride -> 8 audio tokens
    Adim = 128          # audio_embed_dim (scaled down from 4096)
    C = 10              # args.num_classes

    key = jax.random.PRNGKey(0)
    k_v, k_t, k_a, k_p = jax.random.split(key, 4)

    video = jax.random.normal(k_v, (B, Nv, Vdim), jnp.float32)
    text = jax.random.normal(k_t, (B, Nt, Tdim), jnp.float32)
    audio = jax.random.normal(k_a, (B, F, T), jnp.float32)
    nframes = jnp.full((B,), T, jnp.int32)
    category = jnp.zeros((B,), jnp.int32)

    params = init_params(k_p, D, Vdim, Tdim, F, KER, Adim, C)

    vav, ata, tvt = everything_at_once_forward(
        video, audio, nframes, text, category, params, num_classes=C)
    jax.block_until_ready((vav, ata, tvt))

    assert vav.shape == (B, C) and ata.shape == (B, C) and tvt.shape == (B, C)
    print("KERNEL_OK")
</pallas_src>

<mosaic_0001>
module attributes {stable_mosaic.version = 11 : i64} {
  func.func @_eao_forward_kernel(%arg0: memref<2x8x256xf32, #tpu.memory_space<vmem>>, %arg1: memref<2x16x64xf32, #tpu.memory_space<vmem>>, %arg2: memref<2x8x128xf32, #tpu.memory_space<vmem>>, %arg3: memref<448x128xbf16, #tpu.memory_space<vmem>>, %arg4: memref<128x128xbf16, #tpu.memory_space<vmem>>, %arg5: memref<384x384xbf16, #tpu.memory_space<vmem>>, %arg6: memref<12x384xf32, #tpu.memory_space<vmem>>, %arg7: memref<2x384xf32, #tpu.memory_space<vmem>>) attributes {dimension_semantics = [], scalar_prefetch = 0 : i64, scratch_operands = 0 : i64, tpu.core_type = #tpu.core_type<tc>} {
    %c0 = arith.constant 0 : index
    %c0_0 = arith.constant 0 : index
    %c0_1 = arith.constant 0 : index
    %0 = vector.load %arg0[%c0, %c0_0, %c0_1] : memref<2x8x256xf32, #tpu.memory_space<vmem>>, vector<2x8x256xf32>
    %1 = vector.shape_cast %0 : vector<2x8x256xf32> to vector<16x256xf32>
    %2 = arith.truncf %1 : vector<16x256xf32> to vector<16x256xbf16>
    %c0_2 = arith.constant 0 : index
    %c0_3 = arith.constant 0 : index
    %3 = vector.load %arg3[%c0_2, %c0_3] : memref<448x128xbf16, #tpu.memory_space<vmem>>, vector<256x128xbf16>
    %cst = arith.constant dense<0.000000e+00> : vector<16x128xf32>
    %4 = tpu.matmul %2, %3, %cst {dimension_numbers = #tpu.dot_dimension_numbers<[1], [0], [0], [1], [0, 0, 1, 1], [], []>} : vector<16x256xbf16>, vector<256x128xbf16>, vector<16x128xf32> -> vector<16x128xf32>
    %c0_4 = arith.constant 0 : index
    %c0_5 = arith.constant 0 : index
    %5 = vector.load %arg6[%c0_4, %c0_5] : memref<12x384xf32, #tpu.memory_space<vmem>>, vector<1x128xf32>
    %6 = vector.broadcast %5 : vector<1x128xf32> to vector<16x128xf32>
    %7 = arith.addf %4, %6 : vector<16x128xf32>
    %cst_6 = arith.constant dense<0.000000e+00> : vector<16xf32>
    %8 = vector.multi_reduction <add>, %7, %cst_6 [1] : vector<16x128xf32> to vector<16xf32>
    %9 = vector.shape_cast %8 : vector<16xf32> to vector<16x1xf32>
    %cst_7 = arith.constant 1.280000e+02 : f32
    %10 = vector.broadcast %cst_7 : f32 to vector<16x1xf32>
    %11 = arith.divf %9, %10 : vector<16x1xf32>
    %12 = vector.broadcast %11 : vector<16x1xf32> to vector<16x128xf32>
    %13 = arith.subf %7, %12 : vector<16x128xf32>
    %14 = arith.mulf %13, %13 : vector<16x128xf32>
    %cst_8 = arith.constant dense<0.000000e+00> : vector<16xf32>
    %15 = vector.multi_reduction <add>, %14, %cst_8 [1] : vector<16x128xf32> to vector<16xf32>
    %16 = vector.shape_cast %15 : vector<16xf32> to vector<16x1xf32>
    %cst_9 = arith.constant 1.280000e+02 : f32
    %17 = vector.broadcast %cst_9 : f32 to vector<16x1xf32>
    %18 = arith.divf %16, %17 : vector<16x1xf32>
    %cst_10 = arith.constant 9.99999997E-7 : f32
    %19 = vector.broadcast %cst_10 : f32 to vector<16x1xf32>
    %20 = arith.addf %18, %19 : vector<16x1xf32>
    %21 = math.rsqrt %20 : vector<16x1xf32>
    %22 = vector.broadcast %21 : vector<16x1xf32> to vector<16x128xf32>
    %23 = arith.mulf %13, %22 : vector<16x128xf32>
    %c1 = arith.constant 1 : index
    %c0_11 = arith.constant 0 : index
    %24 = vector.load %arg6[%c1, %c0_11] : memref<12x384xf32, #tpu.memory_space<vmem>>, vector<1x128xf32>
    %25 = vector.broadcast %24 : vector<1x128xf32> to vector<16x128xf32>
    %26 = arith.mulf %23, %25 : vector<16x128xf32>
    %c2 = arith.constant 2 : index
    %c0_12 = arith.constant 0 : index
    %27 = vector.load %arg6[%c2, %c0_12] : memref<12x384xf32, #tpu.memory_space<vmem>>, vector<1x128xf32>
    %28 = vector.broadcast %27 : vector<1x128xf32> to vector<16x128xf32>
    %29 = arith.addf %26, %28 : vector<16x128xf32>
    %c0_13 = arith.constant 0 : index
    %c0_14 = arith.constant 0 : index
    %c0_15 = arith.constant 0 : index
    %30 = vector.load %arg1[%c0_13, %c0_14, %c0_15] : memref<2x16x64xf32, #tpu.memory_space<vmem>>, vector<2x16x64xf32>
    %31 = vector.shape_cast %30 : vector<2x16x64xf32> to vector<32x64xf32>
    %32 = arith.truncf %31 : vector<32x64xf32> to vector<32x64xbf16>
    %c256 = arith.constant 256 : index
    %c0_16 = arith.constant 0 : index
    %33 = vector.load %arg3[%c256, %c0_16] : memref<448x128xbf16, #tpu.memory_space<vmem>>, vector<64x128xbf16>
    %cst_17 = arith.constant dense<0.000000e+00> : vector<32x128xf32>
    %34 = tpu.matmul %32, %33, %cst_17 {dimension_numbers = #tpu.dot_dimension_numbers<[1], [0], [0], [1], [0, 0, 1, 1], [], []>} : vector<32x64xbf16>, vector<64x128xbf16>, vector<32x128xf32> -> vector<32x128xf32>
    %c3 = arith.constant 3 : index
    %c0_18 = arith.constant 0 : index
    %35 = vector.load %arg6[%c3, %c0_18] : memref<12x384xf32, #tpu.memory_space<vmem>>, vector<1x128xf32>
    %36 = vector.broadcast %35 : vector<1x128xf32> to vector<32x128xf32>
    %37 = arith.addf %34, %36 : vector<32x128xf32>
    %cst_19 = arith.constant dense<0.000000e+00> : vector<32xf32>
    %38 = vector.multi_reduction <add>, %37, %cst_19 [1] : vector<32x128xf32> to vector<32xf32>
    %39 = vector.shape_cast %38 : vector<32xf32> to vector<32x1xf32>
    %cst_20 = arith.constant 1.280000e+02 : f32
    %40 = vector.broadcast %cst_20 : f32 to vector<32x1xf32>
    %41 = arith.divf %39, %40 : vector<32x1xf32>
    %42 = vector.broadcast %41 : vector<32x1xf32> to vector<32x128xf32>
    %43 = arith.subf %37, %42 : vector<32x128xf32>
    %44 = arith.mulf %43, %43 : vector<32x128xf32>
    %cst_21 = arith.constant dense<0.000000e+00> : vector<32xf32>
    %45 = vector.multi_reduction <add>, %44, %cst_21 [1] : vector<32x128xf32> to vector<32xf32>
    %46 = vector.shape_cast %45 : vector<32xf32> to vector<32x1xf32>
    %cst_22 = arith.constant 1.280000e+02 : f32
    %47 = vector.broadcast %cst_22 : f32 to vector<32x1xf32>
    %48 = arith.divf %46, %47 : vector<32x1xf32>
    %cst_23 = arith.constant 9.99999997E-7 : f32
    %49 = vector.broadcast %cst_23 : f32 to vector<32x1xf32>
    %50 = arith.addf %48, %49 : vector<32x1xf32>
    %51 = math.rsqrt %50 : vector<32x1xf32>
    %52 = vector.broadcast %51 : vector<32x1xf32> to vector<32x128xf32>
    %53 = arith.mulf %43, %52 : vector<32x128xf32>
    %c4 = arith.constant 4 : index
    %c0_24 = arith.constant 0 : index
    %54 = vector.load %arg6[%c4, %c0_24] : memref<12x384xf32, #tpu.memory_space<vmem>>, vector<1x128xf32>
    %55 = vector.broadcast %54 : vector<1x128xf32> to vector<32x128xf32>
    %56 = arith.mulf %53, %55 : vector<32x128xf32>
    %c5 = arith.constant 5 : index
    %c0_25 = arith.constant 0 : index
    %57 = vector.load %arg6[%c5, %c0_25] : memref<12x384xf32, #tpu.memory_space<vmem>>, vector<1x128xf32>
    %58 = vector.broadcast %57 : vector<1x128xf32> to vector<32x128xf32>
    %59 = arith.addf %56, %58 : vector<32x128xf32>
    %c0_26 = arith.constant 0 : index
    %c0_27 = arith.constant 0 : index
    %c0_28 = arith.constant 0 : index
    %60 = vector.load %arg2[%c0_26, %c0_27, %c0_28] : memref<2x8x128xf32, #tpu.memory_space<vmem>>, vector<2x8x128xf32>
    %61 = vector.shape_cast %60 : vector<2x8x128xf32> to vector<16x128xf32>
    %62 = arith.truncf %61 : vector<16x128xf32> to vector<16x128xbf16>
    %c0_29 = arith.constant 0 : index
    %c0_30 = arith.constant 0 : index
    %63 = vector.load %arg4[%c0_29, %c0_30] : memref<128x128xbf16, #tpu.memory_space<vmem>>, vector<128x128xbf16>
    %cst_31 = arith.constant dense<0.000000e+00> : vector<16x128xf32>
    %64 = tpu.matmul %62, %63, %cst_31 {dimension_numbers = #tpu.dot_dimension_numbers<[1], [0], [0], [1], [0, 0, 1, 1], [], []>} : vector<16x128xbf16>, vector<128x128xbf16>, vector<16x128xf32> -> vector<16x128xf32>
    %c6 = arith.constant 6 : index
    %c0_32 = arith.constant 0 : index
    %65 = vector.load %arg6[%c6, %c0_32] : memref<12x384xf32, #tpu.memory_space<vmem>>, vector<1x128xf32>
    %66 = vector.broadcast %65 : vector<1x128xf32> to vector<16x128xf32>
    %67 = arith.addf %64, %66 : vector<16x128xf32>
    %68 = arith.truncf %67 : vector<16x128xf32> to vector<16x128xbf16>
    %c320 = arith.constant 320 : index
    %c0_33 = arith.constant 0 : index
    %69 = vector.load %arg3[%c320, %c0_33] : memref<448x128xbf16, #tpu.memory_space<vmem>>, vector<128x128xbf16>
    %cst_34 = arith.constant dense<0.000000e+00> : vector<16x128xf32>
    %70 = tpu.matmul %68, %69, %cst_34 {dimension_numbers = #tpu.dot_dimension_numbers<[1], [0], [0], [1], [0, 0, 1, 1], [], []>} : vector<16x128xbf16>, vector<128x128xbf16>, vector<16x128xf32> -> vector<16x128xf32>
    %c7 = arith.constant 7 : index
    %c0_35 = arith.constant 0 : index
    %71 = vector.load %arg6[%c7, %c0_35] : memref<12x384xf32, #tpu.memory_space<vmem>>, vector<1x128xf32>
    %72 = vector.broadcast %71 : vector<1x128xf32> to vector<16x128xf32>
    %73 = arith.addf %70, %72 : vector<16x128xf32>
    %cst_36 = arith.constant dense<0.000000e+00> : vector<16xf32>
    %74 = vector.multi_reduction <add>, %73, %cst_36 [1] : vector<16x128xf32> to vector<16xf32>
    %75 = vector.shape_cast %74 : vector<16xf32> to vector<16x1xf32>
    %cst_37 = arith.constant 1.280000e+02 : f32
    %76 = vector.broadcast %cst_37 : f32 to vector<16x1xf32>
    %77 = arith.divf %75, %76 : vector<16x1xf32>
    %78 = vector.broadcast %77 : vector<16x1xf32> to vector<16x128xf32>
    %79 = arith.subf %73, %78 : vector<16x128xf32>
    %80 = arith.mulf %79, %79 : vector<16x128xf32>
    %cst_38 = arith.constant dense<0.000000e+00> : vector<16xf32>
    %81 = vector.multi_reduction <add>, %80, %cst_38 [1] : vector<16x128xf32> to vector<16xf32>
    %82 = vector.shape_cast %81 : vector<16xf32> to vector<16x1xf32>
    %cst_39 = arith.constant 1.280000e+02 : f32
    %83 = vector.broadcast %cst_39 : f32 to vector<16x1xf32>
    %84 = arith.divf %82, %83 : vector<16x1xf32>
    %cst_40 = arith.constant 9.99999997E-7 : f32
    %85 = vector.broadcast %cst_40 : f32 to vector<16x1xf32>
    %86 = arith.addf %84, %85 : vector<16x1xf32>
    %87 = math.rsqrt %86 : vector<16x1xf32>
    %88 = vector.broadcast %87 : vector<16x1xf32> to vector<16x128xf32>
    %89 = arith.mulf %79, %88 : vector<16x128xf32>
    %c8 = arith.constant 8 : index
    %c0_41 = arith.constant 0 : index
    %90 = vector.load %arg6[%c8, %c0_41] : memref<12x384xf32, #tpu.memory_space<vmem>>, vector<1x128xf32>
    %91 = vector.broadcast %90 : vector<1x128xf32> to vector<16x128xf32>
    %92 = arith.mulf %89, %91 : vector<16x128xf32>
    %c9 = arith.constant 9 : index
    %c0_42 = arith.constant 0 : index
    %93 = vector.load %arg6[%c9, %c0_42] : memref<12x384xf32, #tpu.memory_space<vmem>>, vector<1x128xf32>
    %94 = vector.broadcast %93 : vector<1x128xf32> to vector<16x128xf32>
    %95 = arith.addf %92, %94 : vector<16x128xf32>
    %96 = tpu.concatenate %29, %59, %95 in 0 : vector<16x128xf32>, vector<32x128xf32>, vector<16x128xf32> -> vector<64x128xf32>
    %97 = arith.truncf %96 : vector<64x128xf32> to vector<64x128xbf16>
    %c0_43 = arith.constant 0 : index
    %c0_44 = arith.constant 0 : index
    %98 = vector.load %arg5[%c0_43, %c0_44] : memref<384x384xbf16, #tpu.memory_space<vmem>>, vector<128x384xbf16>
    %cst_45 = arith.constant dense<0.000000e+00> : vector<64x384xf32>
    %99 = tpu.matmul %97, %98, %cst_45 {dimension_numbers = #tpu.dot_dimension_numbers<[1], [0], [0], [1], [0, 0, 1, 1], [], []>} : vector<64x128xbf16>, vector<128x384xbf16>, vector<64x384xf32> -> vector<64x384xf32>
    %c10 = arith.constant 10 : index
    %c0_46 = arith.constant 0 : index
    %100 = vector.load %arg6[%c10, %c0_46] : memref<12x384xf32, #tpu.memory_space<vmem>>, vector<1x384xf32>
    %101 = vector.broadcast %100 : vector<1x384xf32> to vector<64x384xf32>
    %102 = arith.addf %99, %101 : vector<64x384xf32>
    %103 = vector.extract_strided_slice %102 {offsets = [0, 0], sizes = [16, 384], strides = [1, 1]} : vector<64x384xf32> to vector<16x384xf32>
    %104 = vector.shape_cast %103 : vector<16x384xf32> to vector<2x8x384xf32>
    %105 = vector.extract_strided_slice %102 {offsets = [16, 0], sizes = [32, 384], strides = [1, 1]} : vector<64x384xf32> to vector<32x384xf32>
    %106 = vector.shape_cast %105 : vector<32x384xf32> to vector<2x16x384xf32>
    %107 = vector.extract_strided_slice %102 {offsets = [48, 0], sizes = [16, 384], strides = [1, 1]} : vector<64x384xf32> to vector<16x384xf32>
    %108 = vector.shape_cast %107 : vector<16x384xf32> to vector<2x8x384xf32>
    %109 = vector.extract_strided_slice %104 {offsets = [0, 0, 0], sizes = [2, 8, 128], strides = [1, 1, 1]} : vector<2x8x384xf32> to vector<2x8x128xf32>
    %110 = vector.extract_strided_slice %104 {offsets = [0, 0, 128], sizes = [2, 8, 128], strides = [1, 1, 1]} : vector<2x8x384xf32> to vector<2x8x128xf32>
    %111 = arith.truncf %110 : vector<2x8x128xf32> to vector<2x8x128xbf16>
    %112 = vector.extract_strided_slice %104 {offsets = [0, 0, 256], sizes = [2, 8, 128], strides = [1, 1, 1]} : vector<2x8x384xf32> to vector<2x8x128xf32>
    %113 = arith.truncf %112 : vector<2x8x128xf32> to vector<2x8x128xbf16>
    %114 = vector.extract_strided_slice %106 {offsets = [0, 0, 0], sizes = [2, 16, 128], strides = [1, 1, 1]} : vector<2x16x384xf32> to vector<2x16x128xf32>
    %115 = vector.extract_strided_slice %106 {offsets = [0, 0, 128], sizes = [2, 16, 128], strides = [1, 1, 1]} : vector<2x16x384xf32> to vector<2x16x128xf32>
    %116 = arith.truncf %115 : vector<2x16x128xf32> to vector<2x16x128xbf16>
    %117 = vector.extract_strided_slice %106 {offsets = [0, 0, 256], sizes = [2, 16, 128], strides = [1, 1, 1]} : vector<2x16x384xf32> to vector<2x16x128xf32>
    %118 = arith.truncf %117 : vector<2x16x128xf32> to vector<2x16x128xbf16>
    %119 = vector.extract_strided_slice %108 {offsets = [0, 0, 0], sizes = [2, 8, 128], strides = [1, 1, 1]} : vector<2x8x384xf32> to vector<2x8x128xf32>
    %120 = vector.extract_strided_slice %108 {offsets = [0, 0, 128], sizes = [2, 8, 128], strides = [1, 1, 1]} : vector<2x8x384xf32> to vector<2x8x128xf32>
    %121 = arith.truncf %120 : vector<2x8x128xf32> to vector<2x8x128xbf16>
    %122 = vector.extract_strided_slice %108 {offsets = [0, 0, 256], sizes = [2, 8, 128], strides = [1, 1, 1]} : vector<2x8x384xf32> to vector<2x8x128xf32>
    %123 = arith.truncf %122 : vector<2x8x128xf32> to vector<2x8x128xbf16>
    %124 = tpu.concatenate %119, %114 in 1 : vector<2x8x128xf32>, vector<2x16x128xf32> -> vector<2x24x128xf32>
    %125 = arith.truncf %124 : vector<2x24x128xf32> to vector<2x24x128xbf16>
    "tpu.trace_start"() <{level = 10 : i32, message = "bqd,bkd->bqk"}> : () -> ()
    %cst_47 = arith.constant dense<0.000000e+00> : vector<2x24x8xf32>
    %126 = tpu.matmul %125, %111, %cst_47 {dimension_numbers = #tpu.dot_dimension_numbers<[2], [2], [1], [1], [0, 0, 0, 1, 1, 1], [0], [0]>} : vector<2x24x128xbf16>, vector<2x8x128xbf16>, vector<2x24x8xf32> -> vector<2x24x8xf32>
    "tpu.trace_stop"() : () -> ()
    %cst_48 = arith.constant dense<0xFF800000> : vector<2x24xf32>
    %127 = vector.multi_reduction <maximumf>, %126, %cst_48 [2] : vector<2x24x8xf32> to vector<2x24xf32>
    %128 = vector.shape_cast %127 : vector<2x24xf32> to vector<2x24x1xf32>
    %129 = vector.broadcast %128 : vector<2x24x1xf32> to vector<2x24x8xf32>
    %130 = arith.subf %126, %129 : vector<2x24x8xf32>
    %131 = math.exp %130 : vector<2x24x8xf32>
    %cst_49 = arith.constant dense<0.000000e+00> : vector<2x24xf32>
    %132 = vector.multi_reduction <add>, %131, %cst_49 [2] : vector<2x24x8xf32> to vector<2x24xf32>
    %133 = vector.shape_cast %132 : vector<2x24xf32> to vector<2x24x1xf32>
    %134 = tpu.reciprocal %133 {approx = true} : vector<2x24x1xf32> -> vector<2x24x1xf32>
    %135 = vector.broadcast %134 : vector<2x24x1xf32> to vector<2x24x8xf32>
    %136 = arith.mulf %131, %135 : vector<2x24x8xf32>
    %137 = arith.truncf %136 : vector<2x24x8xf32> to vector<2x24x8xbf16>
    "tpu.trace_start"() <{level = 10 : i32, message = "bqk,bkd->bqd"}> : () -> ()
    %cst_50 = arith.constant dense<0.000000e+00> : vector<2x24x128xf32>
    %138 = tpu.matmul %137, %113, %cst_50 {dimension_numbers = #tpu.dot_dimension_numbers<[2], [1], [1], [2], [0, 0, 0, 1, 1, 2], [0], [0]>} : vector<2x24x8xbf16>, vector<2x8x128xbf16>, vector<2x24x128xf32> -> vector<2x24x128xf32>
    "tpu.trace_stop"() : () -> ()
    %139 = vector.extract_strided_slice %138 {offsets = [0, 0, 0], sizes = [2, 8, 128], strides = [1, 1, 1]} : vector<2x24x128xf32> to vector<2x8x128xf32>
    %cst_51 = arith.constant dense<0.000000e+00> : vector<2x128xf32>
    %140 = vector.multi_reduction <add>, %139, %cst_51 [1] : vector<2x8x128xf32> to vector<2x128xf32>
    %cst_52 = arith.constant 8.000000e+00 : f32
    %141 = vector.broadcast %cst_52 : f32 to vector<2x128xf32>
    %142 = arith.divf %140, %141 : vector<2x128xf32>
    %143 = vector.extract_strided_slice %138 {offsets = [0, 8, 0], sizes = [2, 16, 128], strides = [1, 1, 1]} : vector<2x24x128xf32> to vector<2x16x128xf32>
    %cst_53 = arith.constant dense<0.000000e+00> : vector<2x128xf32>
    %144 = vector.multi_reduction <add>, %143, %cst_53 [1] : vector<2x16x128xf32> to vector<2x128xf32>
    %cst_54 = arith.constant 1.600000e+01 : f32
    %145 = vector.broadcast %cst_54 : f32 to vector<2x128xf32>
    %146 = arith.divf %144, %145 : vector<2x128xf32>
    %147 = tpu.concatenate %109, %114 in 1 : vector<2x8x128xf32>, vector<2x16x128xf32> -> vector<2x24x128xf32>
    %148 = arith.truncf %147 : vector<2x24x128xf32> to vector<2x24x128xbf16>
    "tpu.trace_start"() <{level = 10 : i32, message = "bqd,bkd->bqk"}> : () -> ()
    %cst_55 = arith.constant dense<0.000000e+00> : vector<2x24x8xf32>
    %149 = tpu.matmul %148, %121, %cst_55 {dimension_numbers = #tpu.dot_dimension_numbers<[2], [2], [1], [1], [0, 0, 0, 1, 1, 1], [0], [0]>} : vector<2x24x128xbf16>, vector<2x8x128xbf16>, vector<2x24x8xf32> -> vector<2x24x8xf32>
    "tpu.trace_stop"() : () -> ()
    %cst_56 = arith.constant dense<0xFF800000> : vector<2x24xf32>
    %150 = vector.multi_reduction <maximumf>, %149, %cst_56 [2] : vector<2x24x8xf32> to vector<2x24xf32>
    %151 = vector.shape_cast %150 : vector<2x24xf32> to vector<2x24x1xf32>
    %152 = vector.broadcast %151 : vector<2x24x1xf32> to vector<2x24x8xf32>
    %153 = arith.subf %149, %152 : vector<2x24x8xf32>
    %154 = math.exp %153 : vector<2x24x8xf32>
    %cst_57 = arith.constant dense<0.000000e+00> : vector<2x24xf32>
    %155 = vector.multi_reduction <add>, %154, %cst_57 [2] : vector<2x24x8xf32> to vector<2x24xf32>
    %156 = vector.shape_cast %155 : vector<2x24xf32> to vector<2x24x1xf32>
    %157 = tpu.reciprocal %156 {approx = true} : vector<2x24x1xf32> -> vector<2x24x1xf32>
    %158 = vector.broadcast %157 : vector<2x24x1xf32> to vector<2x24x8xf32>
    %159 = arith.mulf %154, %158 : vector<2x24x8xf32>
    %160 = arith.truncf %159 : vector<2x24x8xf32> to vector<2x24x8xbf16>
    "tpu.trace_start"() <{level = 10 : i32, message = "bqk,bkd->bqd"}> : () -> ()
    %cst_58 = arith.constant dense<0.000000e+00> : vector<2x24x128xf32>
    %161 = tpu.matmul %160, %123, %cst_58 {dimension_numbers = #tpu.dot_dimension_numbers<[2], [1], [1], [2], [0, 0, 0, 1, 1, 2], [0], [0]>} : vector<2x24x8xbf16>, vector<2x8x128xbf16>, vector<2x24x128xf32> -> vector<2x24x128xf32>
    "tpu.trace_stop"() : () -> ()
    %162 = vector.extract_strided_slice %161 {offsets = [0, 0, 0], sizes = [2, 8, 128], strides = [1, 1, 1]} : vector<2x24x128xf32> to vector<2x8x128xf32>
    %cst_59 = arith.constant dense<0.000000e+00> : vector<2x128xf32>
    %163 = vector.multi_reduction <add>, %162, %cst_59 [1] : vector<2x8x128xf32> to vector<2x128xf32>
    %cst_60 = arith.constant 8.000000e+00 : f32
    %164 = vector.broadcast %cst_60 : f32 to vector<2x128xf32>
    %165 = arith.divf %163, %164 : vector<2x128xf32>
    %166 = vector.extract_strided_slice %161 {offsets = [0, 8, 0], sizes = [2, 16, 128], strides = [1, 1, 1]} : vector<2x24x128xf32> to vector<2x16x128xf32>
    %cst_61 = arith.constant dense<0.000000e+00> : vector<2x128xf32>
    %167 = vector.multi_reduction <add>, %166, %cst_61 [1] : vector<2x16x128xf32> to vector<2x128xf32>
    %cst_62 = arith.constant 1.600000e+01 : f32
    %168 = vector.broadcast %cst_62 : f32 to vector<2x128xf32>
    %169 = arith.divf %167, %168 : vector<2x128xf32>
    %170 = tpu.concatenate %119, %109 in 1 : vector<2x8x128xf32>, vector<2x8x128xf32> -> vector<2x16x128xf32>
    %171 = arith.truncf %170 : vector<2x16x128xf32> to vector<2x16x128xbf16>
    "tpu.trace_start"() <{level = 10 : i32, message = "bqd,bkd->bqk"}> : () -> ()
    %cst_63 = arith.constant dense<0.000000e+00> : vector<2x16x16xf32>
    %172 = tpu.matmul %171, %116, %cst_63 {dimension_numbers = #tpu.dot_dimension_numbers<[2], [2], [1], [1], [0, 0, 0, 1, 1, 1], [0], [0]>} : vector<2x16x128xbf16>, vector<2x16x128xbf16>, vector<2x16x16xf32> -> vector<2x16x16xf32>
    "tpu.trace_stop"() : () -> ()
    %cst_64 = arith.constant dense<0xFF800000> : vector<2x16xf32>
    %173 = vector.multi_reduction <maximumf>, %172, %cst_64 [2] : vector<2x16x16xf32> to vector<2x16xf32>
    %174 = vector.shape_cast %173 : vector<2x16xf32> to vector<2x16x1xf32>
    %175 = vector.broadcast %174 : vector<2x16x1xf32> to vector<2x16x16xf32>
    %176 = arith.subf %172, %175 : vector<2x16x16xf32>
    %177 = math.exp %176 : vector<2x16x16xf32>
    %cst_65 = arith.constant dense<0.000000e+00> : vector<2x16xf32>
    %178 = vector.multi_reduction <add>, %177, %cst_65 [2] : vector<2x16x16xf32> to vector<2x16xf32>
    %179 = vector.shape_cast %178 : vector<2x16xf32> to vector<2x16x1xf32>
    %180 = tpu.reciprocal %179 {approx = true} : vector<2x16x1xf32> -> vector<2x16x1xf32>
    %181 = vector.broadcast %180 : vector<2x16x1xf32> to vector<2x16x16xf32>
    %182 = arith.mulf %177, %181 : vector<2x16x16xf32>
    %183 = arith.truncf %182 : vector<2x16x16xf32> to vector<2x16x16xbf16>
    "tpu.trace_start"() <{level = 10 : i32, message = "bqk,bkd->bqd"}> : () -> ()
    %cst_66 = arith.constant dense<0.000000e+00> : vector<2x16x128xf32>
    %184 = tpu.matmul %183, %118, %cst_66 {dimension_numbers = #tpu.dot_dimension_numbers<[2], [1], [1], [2], [0, 0, 0, 1, 1, 2], [0], [0]>} : vector<2x16x16xbf16>, vector<2x16x128xbf16>, vector<2x16x128xf32> -> vector<2x16x128xf32>
    "tpu.trace_stop"() : () -> ()
    %185 = vector.extract_strided_slice %184 {offsets = [0, 0, 0], sizes = [2, 8, 128], strides = [1, 1, 1]} : vector<2x16x128xf32> to vector<2x8x128xf32>
    %cst_67 = arith.constant dense<0.000000e+00> : vector<2x128xf32>
    %186 = vector.multi_reduction <add>, %185, %cst_67 [1] : vector<2x8x128xf32> to vector<2x128xf32>
    %cst_68 = arith.constant 8.000000e+00 : f32
    %187 = vector.broadcast %cst_68 : f32 to vector<2x128xf32>
    %188 = arith.divf %186, %187 : vector<2x128xf32>
    %189 = vector.extract_strided_slice %184 {offsets = [0, 8, 0], sizes = [2, 8, 128], strides = [1, 1, 1]} : vector<2x16x128xf32> to vector<2x8x128xf32>
    %cst_69 = arith.constant dense<0.000000e+00> : vector<2x128xf32>
    %190 = vector.multi_reduction <add>, %189, %cst_69 [1] : vector<2x8x128xf32> to vector<2x128xf32>
    %cst_70 = arith.constant 8.000000e+00 : f32
    %191 = vector.broadcast %cst_70 : f32 to vector<2x128xf32>
    %192 = arith.divf %190, %191 : vector<2x128xf32>
    %c128 = arith.constant 128 : index
    %c0_71 = arith.constant 0 : index
    %193 = vector.load %arg5[%c128, %c0_71] : memref<384x384xbf16, #tpu.memory_space<vmem>>, vector<256x384xbf16>
    %194 = tpu.concatenate %142, %165 in 1 : vector<2x128xf32>, vector<2x128xf32> -> vector<2x256xf32>
    %195 = arith.truncf %194 : vector<2x256xf32> to vector<2x256xbf16>
    %196 = vector.extract_strided_slice %193 {offsets = [0, 0], sizes = [256, 128], strides = [1, 1]} : vector<256x384xbf16> to vector<256x128xbf16>
    %cst_72 = arith.constant dense<0.000000e+00> : vector<2x128xf32>
    %197 = tpu.matmul %195, %196, %cst_72 {dimension_numbers = #tpu.dot_dimension_numbers<[1], [0], [0], [1], [0, 0, 1, 1], [], []>} : vector<2x256xbf16>, vector<256x128xbf16>, vector<2x128xf32> -> vector<2x128xf32>
    %198 = tpu.concatenate %169, %188 in 1 : vector<2x128xf32>, vector<2x128xf32> -> vector<2x256xf32>
    %199 = arith.truncf %198 : vector<2x256xf32> to vector<2x256xbf16>
    %200 = vector.extract_strided_slice %193 {offsets = [0, 128], sizes = [256, 128], strides = [1, 1]} : vector<256x384xbf16> to vector<256x128xbf16>
    %cst_73 = arith.constant dense<0.000000e+00> : vector<2x128xf32>
    %201 = tpu.matmul %199, %200, %cst_73 {dimension_numbers = #tpu.dot_dimension_numbers<[1], [0], [0], [1], [0, 0, 1, 1], [], []>} : vector<2x256xbf16>, vector<256x128xbf16>, vector<2x128xf32> -> vector<2x128xf32>
    %202 = tpu.concatenate %192, %146 in 1 : vector<2x128xf32>, vector<2x128xf32> -> vector<2x256xf32>
    %203 = arith.truncf %202 : vector<2x256xf32> to vector<2x256xbf16>
    %204 = vector.extract_strided_slice %193 {offsets = [0, 256], sizes = [256, 128], strides = [1, 1]} : vector<256x384xbf16> to vector<256x128xbf16>
    %cst_74 = arith.constant dense<0.000000e+00> : vector<2x128xf32>
    %205 = tpu.matmul %203, %204, %cst_74 {dimension_numbers = #tpu.dot_dimension_numbers<[1], [0], [0], [1], [0, 0, 1, 1], [], []>} : vector<2x256xbf16>, vector<256x128xbf16>, vector<2x128xf32> -> vector<2x128xf32>
    %206 = tpu.concatenate %197, %201, %205 in 1 : vector<2x128xf32>, vector<2x128xf32>, vector<2x128xf32> -> vector<2x384xf32>
    %c11 = arith.constant 11 : index
    %c0_75 = arith.constant 0 : index
    %207 = vector.load %arg6[%c11, %c0_75] : memref<12x384xf32, #tpu.memory_space<vmem>>, vector<1x384xf32>
    %208 = vector.broadcast %207 : vector<1x384xf32> to vector<2x384xf32>
    %209 = arith.addf %206, %208 : vector<2x384xf32>
    %c0_76 = arith.constant 0 : index
    %c0_77 = arith.constant 0 : index
    %210 = vector.load %arg7[%c0_76, %c0_77] : memref<2x384xf32, #tpu.memory_space<vmem>>, vector<2x384xf32>
    tpu.vector_store %arg7[%c0_76, %c0_77], %209 {strides = array<i32>} : memref<2x384xf32, #tpu.memory_space<vmem>>, vector<2x384xf32>,
    return
  }
}

</mosaic_0001>

<bundles_post_ra>
// kernel: everything_at_once_forward.1
= control target key start
LH: loop header
LB: loop body
LE: loop exit
PB: predicated region body
PF: predicated region fallthrough
CT: control target
= control target key end

     0   :  { %12 = vsyncpa [#allocation3], 0  ;;  %s3720_s0 = inlined_call_operand.vmem [shape: f32[2,8,256], index: 0, kind: input, shape index: {}]   ;;  %s3721_s1 = inlined_call_operand.hbm [shape: f32[2,16,64], index: 1, kind: input, shape index: {}]   ;;  %s3722_s2 = inlined_call_operand.vmem [shape: f32[2,8,128], index: 2, kind: input, shape index: {}]   ;;  %s3723_s3 = inlined_call_operand.hbm [shape: bf16[448,128], index: 3, kind: input, shape index: {}]   ;;  %s3724_s4 = inlined_call_operand.vmem [shape: bf16[128,128], index: 4, kind: input, shape index: {}]   ;;  %s3725_s5 = inlined_call_operand.vmem [shape: bf16[384,384], index: 5, kind: input, shape index: {}]   ;;  %s3726_s6 = inlined_call_operand.vmem [shape: f32[12,384], index: 6, kind: input, shape index: {}]   ;;  %s3727_s7 = inlined_call_operand.vmem [shape: f32[2,384], index: 7, kind: output, shape index: {}]  }
   0x1   :  { %13 = vsyncpa [#allocation5], 0  ;;  %s3081_s24 = smov [#allocation2]   ;;  %s3033_s28 = scalar_lea.hbm %s3721_s1, 512 }
   0x2   :  { %s21_s25 = sshll.u32 %s3081_s24, 4  ;;  %p3034_p0 = scmp.ne.s32.totalorder %s3721_s1, %s3033_s28  ;;  %s22_s25 = int_to_ptr.vmem [resolvable:$true] %s21_s25 }
   0x3   :  { %p3037_p1 = scmp.lt.u32.totalorder %s3033_s28, %s3721_s1 }
   0x5   :  { %p3039_p2 = pnand %p3037_p1, %p3034_p0 }
   0x7   :  { %3042 = shalt.err (!%p3039_p2)
}
   0x8   :  { %s3043_s10 = scalar_lea.vmem %s22_s25, 512  ;;  %p3048_p4 = scmp.lt.s32.totalorder %s22_s25, %s22_s25 }
   0x9   :  { %p3044_p3 = scmp.ne.s32.totalorder %s22_s25, %s3043_s10  ;;  %p3049_p5 = scmp.lt.s32.totalorder %s3043_s10, %s3043_s10 }
   0xb   :  { %p3050_p6 = por %p3049_p5, %p3048_p4 }
   0xd   :  { %p3051_p7 = pnand %p3050_p6, %p3044_p3 }
   0xf   :  { %3054 = shalt.err (!%p3051_p7)
}
  0x10   :  { %s3082_s11 = smov 128   ;;  %s3083_s12 = smov 8  }
  0x11   :  { %27 = dma.hbm_to_vmem [thread:$0]  %s3721_s1, 512, %s22_s25, [#allocation3], %s3082_s11, %s3082_s11, %s3083_s12  }
  0x12   :  { %s3084_s15 = smov [#allocation4]   ;;  %s3055_s19 = scalar_lea.hbm %s3723_s3, 3584 }
  0x13   :  { %s35_s16 = sshll.u32 %s3084_s15, 4  ;;  %p3056_p8 = scmp.ne.s32.totalorder %s3723_s3, %s3055_s19  ;;  %s36_s16 = int_to_ptr.vmem [resolvable:$true] %s35_s16 }
  0x14   :  { %p3059_p9 = scmp.lt.u32.totalorder %s3055_s19, %s3723_s3 }
  0x16   :  { %p3061_p10 = pnand %p3059_p9, %p3056_p8 }
  0x18   :  { %3064 = shalt.err (!%p3061_p10)
}
  0x19   :  { %s3065_s24 = scalar_lea.vmem %s36_s16, 3584  ;;  %p3070_p12 = scmp.lt.s32.totalorder %s36_s16, %s36_s16 }
  0x1a   :  { %p3066_p11 = scmp.ne.s32.totalorder %s36_s16, %s3065_s24  ;;  %p3071_p13 = scmp.lt.s32.totalorder %s3065_s24, %s3065_s24 }
  0x1c   :  { %p3072_p0 = por %p3071_p13, %p3070_p12 }
  0x1e   :  { %p3073_p1 = pnand %p3072_p0, %p3066_p11 }
  0x20   :  { %3076 = shalt.err (!%p3073_p1)
}
  0x21   :  { %s3085_s1 = smov 64   ;;  %s3086_s25 = smov 4  }
  0x22   :  { %41 = dma.hbm_to_vmem [thread:$0]  %s3723_s3, 3584, %s36_s16, [#allocation5], %s3085_s1, %s3085_s1, %s3086_s25  }
  0x23   :  { %3077 = dma.done.wait [#allocation3], 512  }
  0x24   :  { %3078 = vsyncadd [#allocation3], 4294966784 }
  0x25   :  { %3079 = dma.done.wait [#allocation5], 3584  }
  0x26   :  { %3080 = vsyncadd [#allocation5], 4294963712  ;;  %v3087_v0 = vmov 0.0   ;;  %vm3088_vm0 = vmmov 0   ;;  %v2821_v1 = vld [vmem:[%s3724_s4] sm:$0xff]   ;;  %v2822_v2 = vld [vmem:[%s3724_s4 + $0x8] sm:$0xff]  }
  0x27   :  { %2671 = vmatprep.subr.bf16.mxu1 %v3087_v0  ;;  %2687 = vmatprep.mubr.msk.bf16.mxu1 %vm3088_vm0, %v3087_v0  ;;  %v2823_v3 = vld [vmem:[%s3724_s4 + $0x10] sm:$0xff]   ;;  %v2826_v4 = vld [vmem:[#allocation4 + $0x40] sm:$0xff]   ;;  %v2829_v6 = vld [vmem:[#allocation4 + $0x48] sm:$0xff]   ;;  %vm299_vm1 = vcmask 523264   ;;  %vm1162_vm2 = vcmask 1043456   ;;  %vm1085_vm3 = vcmask 64512  }
  0x28   :  { %2672 = vmatpush3.bf16.msra.mxu1 %v2821_v1  ;;  %v2827_v5 = vld [vmem:[#allocation4] sm:$0xff]   ;;  %2503 = vmatprep.subr.bf16.mxu0 %v2826_v4  ;;  %v2830_v7 = vld [vmem:[#allocation4 + $0x8] sm:$0xff]   ;;  %v2824_v8 = vld [vmem:[%s3724_s4 + $0x18] sm:$0xff]   ;;  %vm1928_vm4 = vcmask 1041409   ;;  %vm1699_vm5 = vcmask 130048  }
  0x29   :  { %2673 = vmatprep.subr.bf16.mxu1 %v3087_v0  ;;  %2504 = vmatpush3.bf16.msra.mxu0 %v2827_v5  ;;  %v2832_v9 = vld [vmem:[#allocation4 + $0x50] sm:$0xff]   ;;  %v2825_v11 = vld [vmem:[%s3724_s4 + $0x20] sm:$0xff]   ;;  %v2835_v12 = vld [vmem:[#allocation4 + $0x58] sm:$0xff]  }
  0x2a   :  { %2505 = vmatprep.subr.bf16.mxu0 %v2829_v6  ;;  %v2833_v10 = vld [vmem:[#allocation4 + $0x10] sm:$0xff]   ;;  %v2836_v13 = vld [vmem:[#allocation4 + $0x18] sm:$0xff]   ;;  %v2837_v14 = vld [vmem:[#allocation4 + $0x60] sm:$0xff]  }
  0x2b   :  { %v2828_v15 = vld [vmem:[%s3724_s4 + $0x28] sm:$0xff]   ;;  %v2838_v16 = vld [vmem:[#allocation4 + $0x20] sm:$0xff]   ;;  %v2831_v18 = vld [vmem:[%s3724_s4 + $0x30] sm:$0xff]  }
  0x2c   :  { %2674 = vmatpush3.bf16.msra.mxu1 %v2822_v2  ;;  %v2839_v17 = vld [vmem:[#allocation4 + $0x68] sm:$0xff]   ;;  %v2841_v20 = vld [vmem:[#allocation4 + $0x70] sm:$0xff]   ;;  %v58_v22 = vld [vmem:[%s3720_s0 + $0x18] sm:$0xff] }
  0x2d   :  { %2675 = vmatprep.subr.bf16.mxu1 %v3087_v0  ;;  %2506 = vmatpush3.bf16.msra.mxu0 %v2830_v7  ;;  %v2840_v19 = vld [vmem:[#allocation4 + $0x28] sm:$0xff]   ;;  %v2834_v23 = vld [vmem:[%s3724_s4 + $0x38] sm:$0xff]   ;;  %v409_v24 = vld [vmem:[%s3722_s2] sm:$0xff] }
  0x2e   :  { %2507 = vmatprep.subr.bf16.mxu0 %v2832_v9  ;;  %v56_v21 = vld [vmem:[%s3720_s0 + $0x8] sm:$0xff]  ;;  %v2842_v27 = vld [vmem:[#allocation4 + $0x30] sm:$0xff]   ;;  %v2843_v29 = vld [vmem:[#allocation4 + $0x78] sm:$0xff]  }
  0x2f   :  { %v410_v25 = vld [vmem:[%s3722_s2 + $0x8] sm:$0xff]  ;;  %v60_v26 = vpack.c.bf16 %v58_v22, %v56_v21  ;;  %v2844_v30 = vld [vmem:[#allocation4 + $0x38] sm:$0xff]   ;;  %v55_v31 = vld [vmem:[%s3720_s0] sm:$0xff] }
  0x30   :  { %2676 = vmatpush3.bf16.msra.mxu1 %v2823_v3  ;;  %v411_v28 = vpack.c.bf16 %v410_v25, %v409_v24  ;;  %v2845_v32 = vld [vmem:[#allocation4 + $0x80] sm:$0xff]   ;;  %v57_v33 = vld [vmem:[%s3720_s0 + $0x10] sm:$0xff]  ;;  %v261_v35 = vld [vmem:[#allocation2 + $0x8] sm:$0xff] }
  0x31   :  { %2677 = vmatprep.subr.bf16.mxu1 %v3087_v0  ;;  %2508 = vmatpush3.bf16.msra.mxu0 %v2833_v10  ;;  %v260_v34 = vld [vmem:[#allocation2] sm:$0xff]  ;;  %v59_v36 = vpack.c.bf16 %v57_v33, %v55_v31  ;;  %v2846_v38 = vld [vmem:[#allocation4 + $0x88] sm:$0xff]   ;;  %v2847_v39 = vld [vmem:[#allocation4 + $0x90] sm:$0xff]  }
  0x32   :  { %2509 = vmatprep.subr.bf16.mxu0 %v2835_v12  ;;  %222 = vmatprep.mubr.bf16.mxu0 %v60_v26  ;;  %v264_v37 = vpack.c.bf16 %v261_v35, %v260_v34  ;;  %v2848_v40 = vld [vmem:[#allocation4 + $0x98] sm:$0xff]   ;;  %v262_v41 = vld [vmem:[#allocation2 + $0x10] sm:$0xff]  ;;  %v2849_v43 = vld [vmem:[#allocation4 + $0xa0] sm:$0xff]  }
  0x33   :  { %v263_v42 = vld [vmem:[#allocation2 + $0x18] sm:$0xff]  ;;  %v2850_v45 = vld [vmem:[#allocation4 + $0xa8] sm:$0xff]   ;;  %v2851_v46 = vld [vmem:[#allocation4 + $0xb0] sm:$0xff]  }
  0x34   :  { %2678 = vmatpush3.bf16.msra.mxu1 %v2824_v8  ;;  %v265_v44 = vpack.c.bf16 %v263_v42, %v262_v41  ;;  %v2852_v47 = vld [vmem:[#allocation4 + $0xb8] sm:$0xff]   ;;  %v2853_v48 = vld [vmem:[#allocation4 + $0xc0] sm:$0xff]   ;;  %v2854_v49 = vld [vmem:[#allocation4 + $0xc8] sm:$0xff]  }
  0x35   :  { %2679 = vmatprep.subr.bf16.mxu1 %v3087_v0  ;;  %2510 = vmatpush3.bf16.msra.mxu0 %v2836_v13  ;;  %v2855_v50 = vld [vmem:[#allocation4 + $0xd0] sm:$0xff]   ;;  %v2856_v51 = vld [vmem:[#allocation4 + $0xd8] sm:$0xff]   ;;  %v428_v52 = vld [vmem:[%s3726_s6 + $0x6] ss:$0 sm:$0xff] }
  0x36   :  { %2511 = vmatprep.subr.bf16.mxu0 %v2837_v14  ;;  %v93_v62 = vld [vmem:[%s3726_s6] ss:$0 sm:$0xff]  ;;  %v274_v6 = vld [vmem:[%s3726_s6 + $0x3] ss:$0 sm:$0xff]  ;;  %v535_v22 = vld [vmem:[%s3726_s6 + $0x7] ss:$0 sm:$0xff] }
  0x38   :  { %2680 = vmatpush3.bf16.msra.mxu1 %v2825_v11 }
  0x39   :  { %2681 = vmatprep.subr.bf16.mxu1 %v3087_v0  ;;  %2512 = vmatpush3.bf16.msra.mxu0 %v2838_v16  ;;  %v2859_v16 = vld [vmem:[%s3725_s5 + $0x4] ss:$12 sps:$4 sm:$0xff]  }
  0x3a   :  { %2513 = vmatprep.subr.bf16.mxu0 %v2839_v17 }
  0x3c   :  { %2682 = vmatpush3.bf16.msra.mxu1 %v2828_v15  ;;  %v2857_v15 = vld [vmem:[%s3725_s5] ss:$12 sps:$4 sm:$0xff]  }
  0x3d   :  { %2683 = vmatprep.subr.bf16.mxu1 %v3087_v0  ;;  %2514 = vmatpush3.bf16.msra.mxu0 %v2840_v19 }
  0x3e   :  { %2515 = vmatprep.subr.bf16.mxu0 %v2841_v20 }
  0x40   :  { %2684 = vmatpush3.bf16.msra.mxu1 %v2831_v18 }
  0x41   :  { %2685 = vmatprep.subr.bf16.mxu1 %v3087_v0  ;;  %2516 = vmatpush3.bf16.msra.mxu0 %v2842_v27 }
  0x42   :  { %2517 = vmatprep.subr.bf16.mxu0 %v2843_v29 }
  0x44   :  { %2686 = vmatpush3.bf16.msra.mxu1 %v2834_v23 }
  0x45   :  { %2518 = vmatpush3.bf16.msra.mxu0 %v2844_v30  ;;  %835 = vmatprep.subr.bf16.mxu1 %v2859_v16 }
  0x46   :  { %2659 = vmatprep.subr.bf16.mxu0 %v2845_v32 }
  0x47   :  { %2688 = vmatmul.mubr.bf16.vlgmr.msra.gmra.mrb[0].mxu1 %v411_v28 }
  0x48   :  { %223 = vmatmul.mubr.bf16.vlgmr.msra.gmra.mrb[0].mxu0 %v59_v36  ;;  %836 = vmatpush1.bf16.msra.mxu1 %v2857_v15 }
  0x49   :  { %2660 = vmatpush3.bf16.msra.mxu0 %v2845_v32  ;;  %2667 = vmatprep.mubr.msk.bf16.mxu0 %vm299_vm1, %v264_v37 }
  0x4a   :  { %2661 = vmatprep.subr.bf16.mxu0 %v2846_v38 }
  0x4d   :  { %2662 = vmatpush3.bf16.msra.mxu0 %v2846_v38 }
  0x4e   :  { %2663 = vmatprep.subr.bf16.mxu0 %v2847_v39 }
  0x51   :  { %2664 = vmatpush3.bf16.msra.mxu0 %v2847_v39 }
  0x52   :  { %2665 = vmatprep.subr.bf16.mxu0 %v2848_v40 }
  0x55   :  { %2666 = vmatpush3.bf16.msra.mxu0 %v2848_v40 }
  0x56   :  { %2691 = vmatprep.subr.bf16.mxu0 %v3087_v0 }
  0x58   :  { %2668 = vmatmul.mubr.msk.bf16.vlgmr.msra.gmra.mrb[4].mxu0 %vm299_vm1, %v265_v44 }
  0x59   :  { %2692 = vmatpush3.bf16.msra.mxu0 %v2849_v43  ;;  %2707 = vmatprep.mubr.msk.bf16.mxu0 %vm3088_vm0, %v3087_v0 }
  0x5a   :  { %2693 = vmatprep.subr.bf16.mxu0 %v3087_v0 }
  0x5d   :  { %2694 = vmatpush3.bf16.msra.mxu0 %v2850_v45 }
  0x5e   :  { %2695 = vmatprep.subr.bf16.mxu0 %v3087_v0 }
  0x61   :  { %2696 = vmatpush3.bf16.msra.mxu0 %v2851_v46 }
  0x62   :  { %2697 = vmatprep.subr.bf16.mxu0 %v3087_v0 }
  0x65   :  { %2698 = vmatpush3.bf16.msra.mxu0 %v2852_v47 }
  0x66   :  { %2699 = vmatprep.subr.bf16.mxu0 %v3087_v0 }
  0x69   :  { %2700 = vmatpush3.bf16.msra.mxu0 %v2853_v48  ;;  %v2862_v48 = vld [vmem:[%s3725_s5 + $0x1c] ss:$12 sps:$4 sm:$0xff]  }
  0x6a   :  { %2701 = vmatprep.subr.bf16.mxu0 %v3087_v0  ;;  %837 = vmatprep.subr.bf16.mxu1 %v2862_v48  ;;  %v2882_v48 = vld [vmem:[%s3725_s5 + $0x20] ss:$12 sps:$4 sm:$0xff]  }
  0x6d   :  { %2702 = vmatpush3.bf16.msra.mxu0 %v2854_v49  ;;  %v2860_v49 = vld [vmem:[%s3725_s5 + $0x18] ss:$12 sps:$4 sm:$0xff]  }
  0x6e   :  { %2703 = vmatprep.subr.bf16.mxu0 %v3087_v0  ;;  %838 = vmatpush1.bf16.msra.mxu1 %v2860_v49 }
  0x71   :  { %2704 = vmatpush3.bf16.msra.mxu0 %v2855_v50  ;;  %v2865_v50 = vld [vmem:[%s3725_s5 + $0x34] ss:$12 sps:$4 sm:$0xff]  }
  0x72   :  { %2705 = vmatprep.subr.bf16.mxu0 %v3087_v0  ;;  %839 = vmatprep.subr.bf16.mxu1 %v2865_v50 }
  0x75   :  { %2706 = vmatpush3.bf16.msra.mxu0 %v2856_v51  ;;  %v2863_v51 = vld [vmem:[%s3725_s5 + $0x30] ss:$12 sps:$4 sm:$0xff]  }
  0x76   :  { %840 = vmatpush1.bf16.msra.mxu1 %v2863_v51 }
 0x11a   :  { %v511_v53 = vpop.f32.mrb[0].mxu1 }
 0x11b   :  { %v2689_v54 = vpop.f32.mrb[1].mxu1  ;;  %v512_v56 = vadd.f32 %v511_v53, %v428_v52  ;;  %v2519_v60 = vpop.f32.mrb[0].mxu0  ;;  %v2866_v53 = vld [vmem:[%s3725_s5 + $0x48] ss:$12 sps:$4 sm:$0xff]  }
 0x11c   :  { %v514_v55 = vpop.f32.mrb[2].mxu1  ;;  %v2520_v61 = vpop.f32.mrb[1].mxu0  ;;  %v2871_v54 = vld [vmem:[%s3725_s5 + $0x64] ss:$12 sps:$4 sm:$0xff]  }
 0x11d   :  { %v515_v57 = vadd.f32 %v514_v55, %v428_v52  ;;  %v2690_v58 = vpop.f32.mrb[3].mxu1  ;;  %v2521_v63 = vadd.f32 %v2520_v61, %v2519_v60  ;;  %v2522_v1 = vpop.f32.mrb[2].mxu0  ;;  %v2868_v52 = vld [vmem:[%s3725_s5 + $0x4c] ss:$12 sps:$4 sm:$0xff]   ;;  %v2878_v61 = vld [vmem:[%s3725_s5 + $0xa8] ss:$12 sps:$4 sm:$0xff]  }
 0x11e   :  { %v2523_v2 = vpop.f32.mrb[3].mxu0  ;;  %841 = vmatprep.subr.bf16.mxu1 %v2868_v52  ;;  %v2869_v55 = vld [vmem:[%s3725_s5 + $0x60] ss:$12 sps:$4 sm:$0xff]  }
 0x11f   :  { %v518_v59 = vpack.c.bf16 %v515_v57, %v512_v56  ;;  %v2524_v3 = vadd.f32 %v2523_v2, %v2522_v1  ;;  %v225_v4 = vadd.f32 %v2521_v63, %v93_v62  ;;  %842 = vmatpush1.bf16.msra.mxu1 %v2866_v53  ;;  %v2874_v56 = vld [vmem:[%s3725_s5 + $0x7c] ss:$12 sps:$4 sm:$0xff]   ;;  %v2872_v57 = vld [vmem:[%s3725_s5 + $0x78] ss:$12 sps:$4 sm:$0xff]   ;;  %v2877_v58 = vld [vmem:[%s3725_s5 + $0x94] ss:$12 sps:$4 sm:$0xff]  }
 0x120   :  { %843 = vmatprep.subr.bf16.mxu1 %v2871_v54  ;;  %v2880_v60 = vld [vmem:[%s3725_s5 + $0xac] ss:$12 sps:$4 sm:$0xff]  }
 0x121   :  { %2708 = vmatmul.mubr.bf16.vlgmr.msra.gmra.mrb[8].mxu0 %v518_v59  ;;  %231 = vadd.xlane.f32.xlu0 %v225_v4  ;;  %v228_v5 = vadd.f32 %v2524_v3, %v93_v62  ;;  %v2875_v59 = vld [vmem:[%s3725_s5 + $0x90] ss:$12 sps:$4 sm:$0xff]   ;;  %v3089_v62 = vmov 0   ;;  %v2883_v53 = vld [vmem:[%s3725_s5 + $0x38] ss:$12 sps:$4 sm:$0xff]  }
 0x122   :  { %867 = vmatprep.mubr.bf16.mxu1 %v3089_v62 }
 0x123   :  { %844 = vmatpush1.bf16.msra.mxu1 %v2869_v55 }
 0x124   :  { %845 = vmatprep.subr.bf16.mxu1 %v2874_v56 }
 0x125   :  { %233 = vadd.xlane.f32.xlu0 %v228_v5 }
 0x127   :  { %846 = vmatpush1.bf16.msra.mxu1 %v2872_v57 }
 0x128   :  { %847 = vmatprep.subr.bf16.mxu1 %v2877_v58  ;;  %v2884_v58 = vld [vmem:[%s3725_s5 + $0x50] ss:$12 sps:$4 sm:$0xff]  }
 0x12b   :  { %v2669_v7 = vpop.f32.mrb[4].mxu0  ;;  %848 = vmatpush1.bf16.msra.mxu1 %v2875_v59 }
 0x12c   :  { %v349_v8 = vadd.f32 %v2669_v7, %v274_v6  ;;  %v340_v9 = vpop.f32.mrb[5].mxu0  ;;  %849 = vmatprep.subr.bf16.mxu1 %v2880_v60  ;;  %v2885_v60 = vld [vmem:[%s3725_s5 + $0x68] ss:$12 sps:$4 sm:$0xff]  }
 0x12d   :  { %v341_v10 = vadd.f32 %v340_v9, %v274_v6  ;;  %v2670_v11 = vpop.f32.mrb[6].mxu0 }
 0x12e   :  { %v343_v12 = vpop.f32.mrb[7].mxu0  ;;  %359 = vadd.xlane.f32.xlu0 %v349_v8  ;;  %v352_v14 = vadd.f32 %v2670_v11, %v274_v6 }
 0x12f   :  { %355 = vadd.xlane.f32.xlu1 %v341_v10  ;;  %v344_v13 = vadd.f32 %v343_v12, %v274_v6  ;;  %850 = vmatpush1.bf16.msra.mxu1 %v2878_v61 }
 0x133   :  { %357 = vadd.xlane.f32.xlu1 %v344_v13 }
 0x137   :  { %361 = vadd.xlane.f32.xlu1 %v352_v14 }
 0x1ae   :  { %v232_v17 = vpop.xlane.xlu0 %231 }
 0x1af   :  { %v236_v20 = vmul.f32 0.0078125, %v232_v17 }
 0x1b1   :  { %v3237_v25 = vsub.f32 %v225_v4, %v236_v20 }
 0x1b2   :  { %v234_v19 = vpop.xlane.xlu0 %233 }
 0x1b3   :  { %v237_v23 = vmul.f32 0.0078125, %v234_v19  ;;  %v240_v38 = vmul.f32 %v3237_v25, %v3237_v25 }
 0x1b5   :  { %v3239_v31 = vsub.f32 %v228_v5, %v237_v23 }
 0x1b7   :  { %v241_v41 = vmul.f32 %v3239_v31, %v3239_v31 }
 0x1bb   :  { %v360_v29 = vpop.xlane.xlu0 %359 }
 0x1bc   :  { %v356_v18 = vpop.xlane.xlu1 %355  ;;  %v365_v37 = vmul.f32 0.0078125, %v360_v29 }
 0x1bd   :  { %v363_v26 = vmul.f32 0.0078125, %v356_v18 }
 0x1be   :  { %v3249_v42 = vsub.f32 %v349_v8, %v365_v37  ;;  %v257_v37 = vld [vmem:[%s3726_s6 + $0x2] ss:$0 sm:$0xff] }
 0x1bf   :  { %v3241_v36 = vsub.f32 %v341_v10, %v363_v26 }
 0x1c0   :  { %v358_v21 = vpop.xlane.xlu1 %357  ;;  %v373_v46 = vmul.f32 %v3249_v42, %v3249_v42 }
 0x1c1   :  { %v364_v32 = vmul.f32 0.0078125, %v358_v21  ;;  %v371_v43 = vmul.f32 %v3241_v36, %v3241_v36 }
 0x1c3   :  { %v3245_v39 = vsub.f32 %v344_v13, %v364_v32 }
 0x1c4   :  { %v362_v35 = vpop.xlane.xlu1 %361 }
 0x1c5   :  { %v366_v40 = vmul.f32 0.0078125, %v362_v35  ;;  %v372_v45 = vmul.f32 %v3245_v39, %v3245_v39 }
 0x1c7   :  { %v3253_v44 = vsub.f32 %v352_v14, %v366_v40 }
 0x1c9   :  { %v374_v47 = vmul.f32 %v3253_v44, %v3253_v44 }
 0x1f4   :  { %v618_v24 = vpop.f32.mrb[8].mxu0 }
 0x1f5   :  { %v619_v27 = vadd.f32 %v618_v24, %v535_v22  ;;  %v2709_v28 = vpop.f32.mrb[9].mxu0 }
 0x1f6   :  { %v621_v30 = vpop.f32.mrb[10].mxu0  ;;  %v254_v28 = vld [vmem:[%s3726_s6 + $0x1] ss:$0 sm:$0xff] }
 0x1f7   :  { %v622_v33 = vadd.f32 %v621_v30, %v535_v22  ;;  %v2710_v34 = vpop.f32.mrb[11].mxu0  ;;  %625 = vadd.xlane.f32.xlu0 %v619_v27  ;;  %v2881_v30 = vld [vmem:[%s3725_s5 + $0x8] ss:$12 sps:$4 sm:$0xff]  }
 0x1f8   :  { %2711 = vmatprep.subr.bf16.mxu1 %v2881_v30 }
 0x1f9   :  { %627 = vadd.xlane.f32.xlu1 %v622_v33 }
 0x1fb   :  { %242 = vadd.xlane.f32.xlu0 %v240_v38 }
 0x1fd   :  { %244 = vadd.xlane.f32.xlu1 %v241_v41 }
 0x1ff   :  { %375 = vadd.xlane.f32.xlu0 %v371_v43 }
 0x201   :  { %377 = vadd.xlane.f32.xlu1 %v372_v45 }
 0x203   :  { %379 = vadd.xlane.f32.xlu0 %v373_v46  ;;  %v399_v46 = vld [vmem:[%s3726_s6 + $0x4] ss:$0 sm:$0xff] }
 0x205   :  { %381 = vadd.xlane.f32.xlu1 %v374_v47 }
 0x284   :  { %v626_v63 = vpop.xlane.xlu0 %625 }
 0x285   :  { %v629_v1 = vmul.f32 0.0078125, %v626_v63  ;;  %v2886_v63 = vld [vmem:[%s3725_s5 + $0x80] ss:$12 sps:$4 sm:$0xff]  }
 0x286   :  { %v628_v2 = vpop.xlane.xlu1 %627 }
 0x287   :  { %v3304_v3 = vsub.f32 %v619_v27, %v629_v1  ;;  %v630_v4 = vmul.f32 0.0078125, %v628_v2  ;;  %v2887_v1 = vld [vmem:[%s3725_s5 + $0x98] ss:$12 sps:$4 sm:$0xff]   ;;  %v2888_v2 = vld [vmem:[%s3725_s5 + $0xb0] ss:$12 sps:$4 sm:$0xff]  }
 0x288   :  { %v243_v5 = vpop.xlane.xlu0 %242 }
 0x289   :  { %v3306_v6 = vsub.f32 %v622_v33, %v630_v4  ;;  %v246_v7 = vmul.f32 0.0078125, %v243_v5  ;;  %v633_v8 = vmul.f32 %v3304_v3, %v3304_v3 }
 0x28a   :  { %v245_v9 = vpop.xlane.xlu1 %244 }
 0x28b   :  { %v248_v10 = vadd.f32 1e-06, %v246_v7  ;;  %v247_v11 = vmul.f32 0.0078125, %v245_v9  ;;  %635 = vadd.xlane.f32.xlu0 %v633_v8  ;;  %v634_v12 = vmul.f32 %v3306_v6, %v3306_v6 }
 0x28c   :  { %v376_v13 = vpop.xlane.xlu0 %375 }
 0x28d   :  { %2953 = vrsqrt.f32 %v248_v10  ;;  %v249_v14 = vadd.f32 1e-06, %v247_v11  ;;  %v383_v15 = vmul.f32 0.0078125, %v376_v13  ;;  %637 = vadd.xlane.f32.xlu1 %v634_v12  ;;  %v647_v11 = vld [vmem:[%s3726_s6 + $0x18] ss:$0 sm:$0xff] }
 0x28e   :  { %v378_v16 = vpop.xlane.xlu1 %377 }
 0x28f   :  { %2955 = vrsqrt.f32 %v249_v14  ;;  %v387_v17 = vadd.f32 1e-06, %v383_v15  ;;  %v384_v18 = vmul.f32 0.0078125, %v378_v16  ;;  %v650_v16 = vld [vmem:[%s3726_s6 + $0x19] ss:$0 sm:$0xff] }
 0x290   :  { %v380_v19 = vpop.xlane.xlu0 %379 }
 0x291   :  { %2957 = vrsqrt.f32 %v387_v17  ;;  %v388_v20 = vadd.f32 1e-06, %v384_v18  ;;  %v385_v21 = vmul.f32 0.0078125, %v380_v19 }
 0x292   :  { %v382_v22 = vpop.xlane.xlu1 %381 }
 0x293   :  { %2959 = vrsqrt.f32 %v388_v20  ;;  %v386_v23 = vmul.f32 0.0078125, %v382_v22  ;;  %v389_v24 = vadd.f32 1e-06, %v385_v21  ;;  %v692_v21 = vlaneseq  ;;  %v2419_v22 = vld [vmem:[%s3726_s6 + $0x1a] ss:$8 sm:$0x7] }
 0x295   :  { %v390_v26 = vadd.f32 1e-06, %v386_v23 }
 0x297   :  { %v2954_v27 = vpop.eup %2953  ;;  %2961 = vrsqrt.f32 %v390_v26 }
 0x298   :  { %v252_v29 = vmul.f32 %v2954_v27, %v3237_v25  ;;  %2963 = vrsqrt.f32 %v389_v24 }
 0x299   :  { %v2956_v32 = vpop.eup %2955 }
 0x29a   :  { %v253_v33 = vmul.f32 %v2956_v32, %v3239_v31  ;;  %v255_v34 = vmul.f32 %v254_v28, %v252_v29 }
 0x29b   :  { %v2958_v35 = vpop.eup %2957 }
 0x29c   :  { %v256_v38 = vmul.f32 %v254_v28, %v253_v33  ;;  %v258_v41 = vadd.f32 %v257_v37, %v255_v34  ;;  %v395_v25 = vmul.f32 %v2958_v35, %v3241_v36  ;;  %v404_v36 = vld [vmem:[%s3726_s6 + $0x5] ss:$0 sm:$0xff] }
 0x29d   :  { %v2960_v40 = vpop.eup %2959 }
 0x29e   :  { %v259_v43 = vadd.f32 %v257_v37, %v256_v38  ;;  %v396_v45 = vmul.f32 %v2960_v40, %v3245_v39  ;;  %v400_v50 = vmul.f32 %v399_v46, %v395_v25 }
 0x2a0   :  { %v3328_v31 = vpack.c.bf16 %v259_v43, %v258_v41  ;;  %v401_v47 = vmul.f32 %v399_v46, %v396_v45  ;;  %v405_v54 = vadd.f32 %v404_v36, %v400_v50 }
 0x2a1   :  { %v2962_v49 = vpop.eup %2961 }
 0x2a2   :  { %868 = vmatmul.mubr.bf16.vlgmr.msra.gmra.mrb[4].mxu1 %v3328_v31  ;;  %v2964_v51 = vpop.eup %2963  ;;  %v406_v39 = vadd.f32 %v404_v36, %v401_v47  ;;  %v398_v52 = vmul.f32 %v2962_v49, %v3253_v44 }
 0x2a3   :  { %877 = vmatprep.mubr.bf16.mxu1 %v3089_v62  ;;  %2712 = vmatpush3.bf16.msra.mxu1 %v2881_v30  ;;  %v397_v55 = vmul.f32 %v2964_v51, %v3249_v42 }
 0x2a4   :  { %2713 = vmatprep.subr.bf16.mxu1 %v2882_v48  ;;  %v654_v56 = vpack.c.bf16 %v406_v39, %v405_v54  ;;  %v403_v57 = vmul.f32 %v399_v46, %v398_v52 }
 0x2a5   :  { %v402_v59 = vmul.f32 %v399_v46, %v397_v55 }
 0x2a6   :  { %v408_v44 = vadd.f32 %v404_v36, %v403_v57 }
 0x2a7   :  { %2714 = vmatpush3.bf16.msra.mxu1 %v2882_v48  ;;  %v407_v42 = vadd.f32 %v404_v36, %v402_v59 }
 0x2a8   :  { %2715 = vmatprep.subr.bf16.mxu1 %v2883_v53 }
 0x2a9   :  { %v655_v61 = vpack.c.bf16 %v408_v44, %v407_v42 }
 0x2aa   :  { %878 = vmatmul.mubr.bf16.gmra.mrb[8].mxu1 %v654_v56 }
 0x2ab   :  { %887 = vmatprep.mubr.bf16.mxu1 %v3089_v62  ;;  %2716 = vmatpush3.bf16.msra.mxu1 %v2883_v53 }
 0x2ac   :  { %2717 = vmatprep.subr.bf16.mxu1 %v2884_v58 }
 0x2af   :  { %2718 = vmatpush3.bf16.msra.mxu1 %v2884_v58 }
 0x2b0   :  { %2719 = vmatprep.subr.bf16.mxu1 %v2885_v60 }
 0x2b2   :  { %888 = vmatmul.mubr.bf16.gmra.mrb[12].mxu1 %v655_v61 }
 0x2b3   :  { %2720 = vmatpush3.bf16.msra.mxu1 %v2885_v60  ;;  %897 = vmatprep.mubr.bf16.mxu1 %v3089_v62 }
 0x2b4   :  { %2721 = vmatprep.subr.bf16.mxu1 %v2886_v63 }
 0x2b7   :  { %2722 = vmatpush3.bf16.msra.mxu1 %v2886_v63 }
 0x2b8   :  { %2723 = vmatprep.subr.bf16.mxu1 %v2887_v1 }
 0x2bb   :  { %2724 = vmatpush3.bf16.msra.mxu1 %v2887_v1 }
 0x2bc   :  { %2725 = vmatprep.subr.bf16.mxu1 %v2888_v2 }
 0x2bf   :  { %2726 = vmatpush3.bf16.msra.mxu1 %v2888_v2 }
 0x318   :  { %v636_v4 = vpop.xlane.xlu0 %635 }
 0x319   :  { %v639_v5 = vmul.f32 0.0078125, %v636_v4 }
 0x31a   :  { %v638_v7 = vpop.xlane.xlu1 %637 }
 0x31b   :  { %v641_v8 = vadd.f32 1e-06, %v639_v5  ;;  %v640_v9 = vmul.f32 0.0078125, %v638_v7 }
 0x31d   :  { %2965 = vrsqrt.f32 %v641_v8  ;;  %v642_v62 = vadd.f32 1e-06, %v640_v9 }
 0x31f   :  { %2967 = vrsqrt.f32 %v642_v62 }
 0x327   :  { %v2966_v10 = vpop.eup %2965 }
 0x328   :  { %v645_v12 = vmul.f32 %v2966_v10, %v3304_v3  ;;  %v3369_v3 = vshrl.u32 %v692_v21, 7 }
 0x329   :  { %v2968_v13 = vpop.eup %2967 }
 0x32a   :  { %v646_v14 = vmul.f32 %v2968_v13, %v3306_v6  ;;  %v648_v15 = vmul.f32 %v647_v11, %v645_v12  ;;  %v698_v6 = vsub.s32 1, %v3369_v3  ;;  %v694_v50 = vsub.s32 0, %v3369_v3 }
 0x32b   :  { %v702_v55 = vsub.s32 2, %v3369_v3 }
 0x32c   :  { %v649_v17 = vmul.f32 %v647_v11, %v646_v14  ;;  %v651_v18 = vadd.f32 %v650_v16, %v648_v15  ;;  %v699_v23 = vrot.slane %v2419_v22, %v698_v6  ;;  %v3396_v51 = vrot.slane %v2419_v22, %v694_v50 }
 0x32d   :  { %v703_v63 = vrot.slane %v2419_v22, %v702_v55 }
 0x32e   :  { %v652_v19 = vadd.f32 %v650_v16, %v649_v17 }
 0x330   :  { %v656_v20 = vpack.c.bf16 %v652_v19, %v651_v18 }
 0x332   :  { %898 = vmatmul.mubr.bf16.gmra.mrb[16].mxu1 %v656_v20 }
 0x333   :  { %2727 = vmatprep.mubr.bf16.mxu1 %v3328_v31 }
 0x33a   :  { %2728 = vmatmul.mubr.bf16.vlgmr.msra.gmra.mrb[20].mxu1 %v654_v56 }
 0x33b   :  { %2731 = vmatprep.mubr.bf16.mxu1 %v655_v61 }
 0x342   :  { %2732 = vmatmul.mubr.bf16.gmra.mrb[24].mxu1 %v656_v20 }
 0x375   :  { %v3377_v24 = vpop.f32.mrb[4].mxu1 }
 0x376   :  { %v871_v26 = vpop.f32.mrb[5].mxu1 }
 0x377   :  { %v872_v27 = vadd.f32 %v871_v26, %v699_v23  ;;  %v3379_v28 = vpop.f32.mrb[6].mxu1 }
 0x378   :  { %v875_v29 = vpop.f32.mrb[7].mxu1 }
 0x379   :  { %v973_v30 = vpack.c.bf16 %v872_v27, %v872_v27  ;;  %v876_v32 = vadd.f32 %v875_v29, %v699_v23 }
 0x37b   :  { %v974_v33 = vpack.c.bf16 %v876_v32, %v876_v32  ;;  %2735 = vmatprep.subr.bf16.mxu0 %v973_v30 }
 0x37c   :  { %2736 = vmatpush3.bf16.xpose.msra.mxu0 %v973_v30 }
 0x37d   :  { %v879_v34 = vpop.f32.mrb[8].mxu1  ;;  %2741 = vmatprep.subr.bf16.mxu1 %v974_v33 }
 0x37e   :  { %v881_v35 = vpop.f32.mrb[9].mxu1  ;;  %2742 = vmatpush3.bf16.xpose.msra.mxu1 %v974_v33  ;;  %v3400_v52 = vadd.f32 %v879_v34, %v3396_v51 }
 0x37f   :  { %v883_v37 = vpop.f32.mrb[10].mxu1  ;;  %v3381_v40 = vadd.f32 %v881_v35, %v699_v23 }
 0x380   :  { %v885_v38 = vpop.f32.mrb[11].mxu1  ;;  %v884_v36 = vadd.f32 %v883_v37, %v3396_v51 }
 0x381   :  { %v3383_v41 = vadd.f32 %v885_v38, %v699_v23 }
 0x382   :  { %v3415_v42 = vpack.c.bf16 %v884_v36, %v884_v36 }
 0x383   :  { %v977_v43 = vpack.c.bf16 %v3383_v41, %v3381_v40 }
 0x385   :  { %v889_v25 = vpop.f32.mrb[12].mxu1 }
 0x386   :  { %v891_v45 = vpop.f32.mrb[13].mxu1  ;;  %v3408_v58 = vadd.f32 %v889_v25, %v3396_v51 }
 0x387   :  { %v893_v46 = vpop.f32.mrb[14].mxu1  ;;  %v3387_v47 = vadd.f32 %v891_v45, %v699_v23 }
 0x388   :  { %v895_v31 = vpop.f32.mrb[15].mxu1  ;;  %v894_v56 = vadd.f32 %v893_v46, %v3396_v51 }
 0x389   :  { %v3389_v48 = vadd.f32 %v895_v31, %v699_v23 }
 0x38a   :  { %v3421_v1 = vpack.c.bf16 %v894_v56, %v894_v56 }
 0x38b   :  { %v978_v49 = vpack.c.bf16 %v3389_v48, %v3387_v47 }
 0x405   :  { %v899_v39 = vpop.f32.mrb[16].mxu1 }
 0x406   :  { %v3403_v53 = vadd.f32 %v899_v39, %v3396_v51  ;;  %v901_v54 = vpop.f32.mrb[17].mxu1 }
 0x407   :  { %v903_v57 = vpop.f32.mrb[18].mxu1  ;;  %v902_v7 = vadd.f32 %v901_v54, %v699_v23 }
 0x408   :  { %v985_v59 = vpack.c.bf16 %v3400_v52, %v3403_v53  ;;  %v3413_v44 = vadd.f32 %v903_v57, %v3396_v51  ;;  %v905_v60 = vpop.f32.mrb[19].mxu1 }
 0x409   :  { %v906_v11 = vadd.f32 %v905_v60, %v699_v23  ;;  %v3431_v15 = vpack.c.bf16 %v902_v7, %v902_v7 }
 0x40a   :  { %v987_v61 = vpack.c.bf16 %v3408_v58, %v3413_v44  ;;  %2737 = vmatprep.mubr.bf16.mxu0 %v985_v59 }
 0x40b   :  { %2738 = vmatmul.mubr.bf16.vlgmr.msra.gmra.mrb[12].mxu0 %v3415_v42  ;;  %v3435_v18 = vpack.c.bf16 %v906_v11, %v906_v11 }
 0x40c   :  { %2743 = vmatprep.mubr.bf16.mxu1 %v987_v61 }
 0x40d   :  { %v2729_v2 = vpop.f32.mrb[20].mxu1  ;;  %2744 = vmatmul.mubr.bf16.vlgmr.msra.gmra.mrb[28].mxu1 %v3421_v1 }
 0x40e   :  { %v3425_v4 = vadd.f32 %v2729_v2, %v703_v63  ;;  %v942_v5 = vpop.f32.mrb[21].mxu1 }
 0x40f   :  { %v943_v8 = vadd.f32 %v942_v5, %v703_v63  ;;  %v2730_v9 = vpop.f32.mrb[22].mxu1 }
 0x410   :  { %v3427_v62 = vadd.f32 %v2730_v9, %v703_v63  ;;  %v945_v10 = vpop.f32.mrb[23].mxu1 }
 0x411   :  { %v975_v12 = vpack.c.bf16 %v943_v8, %v943_v8  ;;  %v946_v13 = vadd.f32 %v945_v10, %v703_v63 }
 0x412   :  { %v979_v14 = vpack.c.bf16 %v3427_v62, %v3425_v4 }
 0x413   :  { %v1164_v16 = vsel %vm1162_vm2, %v975_v12, 0  ;;  %v976_v17 = vpack.c.bf16 %v946_v13, %v946_v13  ;;  %2807 = vmatprep.subr.msk.bf16.mxu0 %vm1162_vm2, %v975_v12 }
 0x414   :  { %2748 = vmatpush3.bf16.msra.mxu0 %v1164_v16 }
 0x415   :  { %v1221_v19 = vsel %vm1162_vm2, %v976_v17, 0  ;;  %v2733_v20 = vpop.f32.mrb[24].mxu1  ;;  %2808 = vmatprep.subr.msk.bf16.mxu1 %vm1162_vm2, %v976_v17  ;;  %2759 = vmatprep.subr.bf16.mxu0 %v3431_v15 }
 0x416   :  { %v3440_v21 = vadd.f32 %v2733_v20, %v703_v63  ;;  %v958_v22 = vpop.f32.mrb[25].mxu1  ;;  %2754 = vmatpush3.bf16.msra.mxu1 %v1221_v19 }
 0x417   :  { %v3442_v23 = vadd.f32 %v958_v22, %v703_v63  ;;  %v2734_v26 = vpop.f32.mrb[26].mxu1  ;;  %2765 = vmatprep.subr.bf16.mxu1 %v3435_v18 }
 0x418   :  { %v3445_v27 = vadd.f32 %v2734_v26, %v703_v63  ;;  %v961_v29 = vpop.f32.mrb[27].mxu1 }
 0x419   :  { %v3447_v30 = vadd.f32 %v961_v29, %v703_v63 }
 0x41b   :  { %v980_v32 = vpack.c.bf16 %v3447_v30, %v3442_v23 }
 0x4de   :  { %v2739_v33 = vpop.f32.mrb[12].mxu0 }
 0x4df   :  { %v1023_v34 = vpop.f32.mrb[13].mxu0  ;;  %v1092_v56 = vsel %vm1085_vm3, %v2739_v33, -inf }
 0x4e0   :  { %v2740_v35 = vpop.f32.mrb[14].mxu0  ;;  %v2745_v37 = vpop.f32.mrb[28].mxu1  ;;  %v1086_v38 = vsel %vm1085_vm3, %v1023_v34, -inf }
 0x4e1   :  { %v1071_v25 = vpop.f32.mrb[29].mxu1  ;;  %1087 = vmax.xlane.f32.xlu0 %v1086_v38  ;;  %v1026_v45 = vpop.f32.mrb[15].mxu0  ;;  %v1101_v57 = vsel %vm1085_vm3, %v2745_v37, -inf }
 0x4e2   :  { %v2746_v46 = vpop.f32.mrb[30].mxu1  ;;  %v1089_v31 = vsel %vm1085_vm3, %v1026_v45, -inf  ;;  %v1095_v39 = vsel %vm1085_vm3, %v1071_v25, -inf }
 0x4e3   :  { %v1074_v36 = vpop.f32.mrb[31].mxu1  ;;  %1090 = vmax.xlane.f32.xlu1 %v1089_v31 }
 0x4e4   :  { %v1098_v54 = vsel %vm1085_vm3, %v1074_v36, -inf }
 0x4e5   :  { %1096 = vmax.xlane.f32.xlu0 %v1095_v39 }
 0x4e7   :  { %1099 = vmax.xlane.f32.xlu1 %v1098_v54 }
 0x4e9   :  { %1093 = vmax.xlane.f32.xlu0 %v1092_v56 }
 0x4eb   :  { %1102 = vmax.xlane.f32.xlu1 %v1101_v57 }
 0x56e   :  { %v1088_v59 = vpop.xlane.xlu0 %1087 }
 0x56f   :  { %v1104_v60 = vsub.f32 %v1023_v34, %v1088_v59 }
 0x570   :  { %v1091_v61 = vpop.xlane.xlu1 %1090 }
 0x571   :  { %v1110_v63 = vmul.f32 1.442695, %v1104_v60  ;;  %v1105_v2 = vsub.f32 %v1026_v45, %v1091_v61 }
 0x572   :  { %v1097_v5 = vpop.xlane.xlu0 %1096 }
 0x573   :  { %2969 = vpow2.f32 %v1110_v63  ;;  %v1112_v7 = vmul.f32 1.442695, %v1105_v2  ;;  %v1107_v8 = vsub.f32 %v1071_v25, %v1097_v5 }
 0x574   :  { %v1100_v9 = vpop.xlane.xlu1 %1099 }
 0x575   :  { %2971 = vpow2.f32 %v1112_v7  ;;  %v1116_v10 = vmul.f32 1.442695, %v1107_v8  ;;  %v1108_v11 = vsub.f32 %v1074_v36, %v1100_v9 }
 0x576   :  { %v1094_v12 = vpop.xlane.xlu0 %1093 }
 0x577   :  { %2973 = vpow2.f32 %v1116_v10  ;;  %v1118_v13 = vmul.f32 1.442695, %v1108_v11  ;;  %v1106_v16 = vsub.f32 %v2739_v33, %v1094_v12 }
 0x578   :  { %v1103_v17 = vpop.xlane.xlu1 %1102 }
 0x579   :  { %2975 = vpow2.f32 %v1118_v13  ;;  %v1114_v19 = vmul.f32 1.442695, %v1106_v16  ;;  %v1109_v20 = vsub.f32 %v2745_v37, %v1103_v17 }
 0x57b   :  { %2977 = vpow2.f32 %v1114_v19  ;;  %v1120_v22 = vmul.f32 1.442695, %v1109_v20  ;;  %v3466_v19 = vadd.f32 %v3377_v24, %v3396_v51 }
 0x57d   :  { %v2970_v26 = vpop.eup %2969  ;;  %2979 = vpow2.f32 %v1120_v22  ;;  %v1615_v40 = vpack.c.bf16 %v3466_v19, %v3403_v53 }
 0x57e   :  { %v1122_v29 = vsel %vm1085_vm3, %v2970_v26, 0.0 }
 0x57f   :  { %v2972_v34 = vpop.eup %2971  ;;  %1123 = vadd.xlane.f32.xlu0 %v1122_v29  ;;  %v1303_v29 = vpack.c.bf16 %v3400_v52, %v3466_v19 }
 0x580   :  { %v1125_v35 = vsel %vm1085_vm3, %v2972_v34, 0.0 }
 0x581   :  { %v2974_v38 = vpop.eup %2973  ;;  %1126 = vadd.xlane.f32.xlu1 %v1125_v35 }
 0x582   :  { %v1131_v25 = vsel %vm1085_vm3, %v2974_v38, 0.0 }
 0x583   :  { %v2976_v45 = vpop.eup %2975  ;;  %1132 = vadd.xlane.f32.xlu0 %v1131_v25 }
 0x584   :  { %v1134_v33 = vsel %vm1085_vm3, %v2976_v45, 0.0 }
 0x585   :  { %v2978_v46 = vpop.eup %2977  ;;  %1135 = vadd.xlane.f32.xlu1 %v1134_v33 }
 0x586   :  { %v1128_v37 = vsel %vm1085_vm3, %v2978_v46, 0.0 }
 0x587   :  { %v2980_v31 = vpop.eup %2979  ;;  %1129 = vadd.xlane.f32.xlu0 %v1128_v37 }
 0x588   :  { %v1137_v36 = vsel %vm1085_vm3, %v2980_v31, 0.0 }
 0x589   :  { %1138 = vadd.xlane.f32.xlu1 %v1137_v36 }
 0x60c   :  { %v1124_v39 = vpop.xlane.xlu0 %1123 }
 0x60d   :  { %2981 = vrcp.f32 %v1124_v39 }
 0x60e   :  { %v1127_v54 = vpop.xlane.xlu1 %1126 }
 0x60f   :  { %2983 = vrcp.f32 %v1127_v54 }
 0x610   :  { %v1133_v56 = vpop.xlane.xlu0 %1132 }
 0x611   :  { %2985 = vrcp.f32 %v1133_v56 }
 0x612   :  { %v1136_v57 = vpop.xlane.xlu1 %1135 }
 0x613   :  { %2987 = vrcp.f32 %v1136_v57 }
 0x614   :  { %v1130_v59 = vpop.xlane.xlu0 %1129 }
 0x615   :  { %2989 = vrcp.f32 %v1130_v59 }
 0x616   :  { %v1139_v60 = vpop.xlane.xlu1 %1138 }
 0x617   :  { %v2982_v61 = vpop.eup %2981  ;;  %2991 = vrcp.f32 %v1139_v60 }
 0x618   :  { %v1146_v2 = vmul.f32 %v2982_v61, %v2970_v26  ;;  %v3471_v26 = vadd.f32 %v3379_v28, %v3396_v51 }
 0x619   :  { %v2984_v63 = vpop.eup %2983 }
 0x61a   :  { %v1147_v5 = vmul.f32 %v2984_v63, %v2972_v34  ;;  %v983_v34 = vpack.c.bf16 %v3440_v21, %v3440_v21  ;;  %v1304_v24 = vpack.c.bf16 %v3408_v58, %v3471_v26  ;;  %v1616_v41 = vpack.c.bf16 %v3471_v26, %v3413_v44 }
 0x61b   :  { %v2986_v7 = vpop.eup %2985 }
 0x61c   :  { %v1152_v8 = vpack.c.bf16 %v1147_v5, %v1146_v2  ;;  %v1149_v10 = vmul.f32 %v2986_v7, %v2974_v38  ;;  %v984_v38 = vpack.c.bf16 %v3445_v27, %v3445_v27  ;;  %v1478_v28 = vsel %vm1162_vm2, %v983_v34, 0 }
 0x61d   :  { %v2988_v9 = vpop.eup %2987 }
 0x61e   :  { %2749 = vmatprep.mubr.msk.bf16.mxu0 %vm1085_vm3, %v1152_v8  ;;  %v1150_v11 = vmul.f32 %v2988_v9, %v2976_v45  ;;  %v1535_v51 = vsel %vm1162_vm2, %v984_v38, 0 }
 0x61f   :  { %v2990_v12 = vpop.eup %2989 }
 0x620   :  { %v1148_v13 = vmul.f32 %v2990_v12, %v2978_v46  ;;  %v1154_v16 = vpack.c.bf16 %v1150_v11, %v1149_v10 }
 0x621   :  { %v2992_v17 = vpop.eup %2991 }
 0x622   :  { %v1151_v20 = vmul.f32 %v2992_v17, %v2980_v31  ;;  %2755 = vmatprep.mubr.msk.bf16.mxu1 %vm1085_vm3, %v1154_v16  ;;  %v1153_v22 = vpack.c.bf16 %v1148_v13, %v1148_v13 }
 0x624   :  { %2750 = vmatmul.mubr.msk.bf16.vlgmr.msra.gmra.mrb[16].mxu0 %vm1085_vm3, %v1153_v22  ;;  %v1155_v35 = vpack.c.bf16 %v1151_v20, %v1151_v20 }
 0x625   :  { %2760 = vmatpush3.bf16.xpose.msra.mxu0 %v3431_v15  ;;  %2761 = vmatprep.mubr.bf16.mxu0 %v1303_v29 }
 0x626   :  { %2809 = vmatprep.subr.msk.bf16.mxu0 %vm1162_vm2, %v983_v34  ;;  %2756 = vmatmul.mubr.msk.bf16.vlgmr.msra.gmra.mrb[32].mxu1 %vm1085_vm3, %v1155_v35 }
 0x627   :  { %2766 = vmatpush3.bf16.xpose.msra.mxu1 %v3435_v18  ;;  %2767 = vmatprep.mubr.bf16.mxu1 %v1304_v24 }
 0x628   :  { %2810 = vmatprep.subr.msk.bf16.mxu1 %vm1162_vm2, %v984_v38 }
 0x62c   :  { %2762 = vmatmul.mubr.bf16.vlgmr.msra.gmra.mrb[20].mxu0 %v3415_v42 }
 0x62d   :  { %2772 = vmatpush3.bf16.msra.mxu0 %v1478_v28 }
 0x62e   :  { %2768 = vmatmul.mubr.bf16.vlgmr.msra.gmra.mrb[36].mxu1 %v3421_v1  ;;  %2783 = vmatprep.subr.bf16.mxu0 %v3087_v0 }
 0x62f   :  { %2778 = vmatpush3.bf16.msra.mxu1 %v1535_v51 }
 0x630   :  { %2789 = vmatprep.subr.bf16.mxu1 %v3087_v0 }
 0x6f7   :  { %v2751_v52 = vpop.f32.mrb[16].mxu0 }
 0x6f8   :  { %v1200_v58 = vpop.f32.mrb[17].mxu0 }
 0x6f9   :  { %v1271_v15 = vrot.slane %v1200_v58, 4  ;;  %v2752_v18 = vpop.f32.mrb[18].mxu0  ;;  %v2757_v21 = vpop.f32.mrb[32].mxu1 }
 0x6fa   :  { %v1203_v27 = vpop.f32.mrb[19].mxu0  ;;  %v1257_v25 = vpop.f32.mrb[33].mxu1 }
 0x6fb   :  { %v1272_v45 = vadd.f32 %v1271_v15, %v1200_v58  ;;  %v1286_v33 = vadd.f32 %v2751_v52, %v1203_v27  ;;  %v1277_v42 = vrot.slane %v1257_v25, 4  ;;  %v2758_v46 = vpop.f32.mrb[34].mxu1 }
 0x6fc   :  { %v1260_v37 = vpop.f32.mrb[35].mxu1 }
 0x6fd   :  { %v1273_v31 = vrot.slane %v1272_v45, 2  ;;  %v1287_v36 = vrot.slane %v1286_v33, 4  ;;  %v1278_v1 = vadd.f32 %v1277_v42, %v1257_v25  ;;  %v1293_v39 = vadd.f32 %v2757_v21, %v1260_v37 }
 0x6ff   :  { %v1274_v54 = vadd.f32 %v1273_v31, %v1272_v45  ;;  %v1288_v56 = vadd.f32 %v1287_v36, %v1286_v33  ;;  %v1279_v57 = vrot.slane %v1278_v1, 2  ;;  %v1294_v59 = vrot.slane %v1293_v39, 4  ;;  %v2763_v60 = vpop.f32.mrb[20].mxu0 }
 0x700   :  { %v1339_v61 = vpop.f32.mrb[21].mxu0  ;;  %v1407_v25 = vsel %vm1085_vm3, %v2763_v60, -inf }
 0x701   :  { %v1275_v63 = vrot.slane %v1274_v54, 1  ;;  %v1289_v2 = vrot.slane %v1288_v56, 2  ;;  %v1280_v5 = vadd.f32 %v1279_v57, %v1278_v1  ;;  %v1295_v7 = vadd.f32 %v1294_v59, %v1293_v39  ;;  %v2764_v8 = vpop.f32.mrb[22].mxu0  ;;  %v2769_v9 = vpop.f32.mrb[36].mxu1 }
 0x702   :  { %v1401_v10 = vsel %vm1085_vm3, %v1339_v61, -inf  ;;  %v1342_v11 = vpop.f32.mrb[23].mxu0  ;;  %v1387_v12 = vpop.f32.mrb[37].mxu1  ;;  %v1416_v42 = vsel %vm1085_vm3, %v2769_v9, -inf }
 0x703   :  { %v1276_v13 = vadd.f32 %v1275_v63, %v1274_v54  ;;  %v1290_v16 = vadd.f32 %v1289_v2, %v1288_v56  ;;  %v1281_v17 = vrot.slane %v1280_v5, 1  ;;  %v1296_v20 = vrot.slane %v1295_v7, 2  ;;  %1402 = vmax.xlane.f32.xlu0 %v1401_v10  ;;  %v2770_v22 = vpop.f32.mrb[38].mxu1 }
 0x704   :  { %v1404_v29 = vsel %vm1085_vm3, %v1342_v11, -inf  ;;  %v1390_v34 = vpop.f32.mrb[39].mxu1  ;;  %v1410_v28 = vsel %vm1085_vm3, %v1387_v12, -inf }
 0x705   :  { %v1291_v35 = vrot.slane %v1290_v16, 1  ;;  %v1282_v24 = vadd.f32 %v1281_v17, %v1280_v5  ;;  %v1297_v38 = vadd.f32 %v1296_v20, %v1295_v7  ;;  %1405 = vmax.xlane.f32.xlu1 %v1404_v29  ;;  %v1284_v51 = vmul.f32 0.125, %v1276_v13 }
 0x706   :  { %v1413_v18 = vsel %vm1085_vm3, %v1390_v34, -inf }
 0x707   :  { %v1292_v52 = vadd.f32 %v1291_v35, %v1290_v16  ;;  %v1285_v58 = vmul.f32 0.125, %v1282_v24  ;;  %v1298_v15 = vrot.slane %v1297_v38, 1  ;;  %1411 = vmax.xlane.f32.xlu0 %v1410_v28 }
 0x709   :  { %v1299_v21 = vadd.f32 %v1298_v15, %v1297_v38  ;;  %1414 = vmax.xlane.f32.xlu1 %v1413_v18  ;;  %v3498_v27 = vsel %vm1928_vm4, %v1285_v58, %v1284_v51  ;;  %v1301_v45 = vmul.f32 0.0625, %v1292_v52 }
 0x70b   :  { %v1302_v33 = vmul.f32 0.0625, %v1299_v21  ;;  %1408 = vmax.xlane.f32.xlu0 %v1407_v25 }
 0x70d   :  { %1417 = vmax.xlane.f32.xlu1 %v1416_v42  ;;  %v3503_v46 = vsel %vm1928_vm4, %v1302_v33, %v1301_v45 }
 0x790   :  { %v1403_v37 = vpop.xlane.xlu0 %1402 }
 0x791   :  { %v1419_v31 = vsub.f32 %v1339_v61, %v1403_v37 }
 0x792   :  { %v1406_v36 = vpop.xlane.xlu1 %1405 }
 0x793   :  { %v1425_v1 = vmul.f32 1.442695, %v1419_v31  ;;  %v1420_v39 = vsub.f32 %v1342_v11, %v1406_v36 }
 0x794   :  { %v1412_v54 = vpop.xlane.xlu0 %1411 }
 0x795   :  { %2993 = vpow2.f32 %v1425_v1  ;;  %v1427_v56 = vmul.f32 1.442695, %v1420_v39  ;;  %v1422_v57 = vsub.f32 %v1387_v12, %v1412_v54 }
 0x796   :  { %v1415_v59 = vpop.xlane.xlu1 %1414 }
 0x797   :  { %2995 = vpow2.f32 %v1427_v56  ;;  %v1431_v63 = vmul.f32 1.442695, %v1422_v57  ;;  %v1423_v2 = vsub.f32 %v1390_v34, %v1415_v59 }
 0x798   :  { %v1409_v5 = vpop.xlane.xlu0 %1408 }
 0x799   :  { %2997 = vpow2.f32 %v1431_v63  ;;  %v1433_v7 = vmul.f32 1.442695, %v1423_v2  ;;  %v1421_v8 = vsub.f32 %v2763_v60, %v1409_v5 }
 0x79a   :  { %v1418_v10 = vpop.xlane.xlu1 %1417 }
 0x79b   :  { %2999 = vpow2.f32 %v1433_v7  ;;  %v1429_v13 = vmul.f32 1.442695, %v1421_v8  ;;  %v1424_v16 = vsub.f32 %v2769_v9, %v1418_v10 }
 0x79d   :  { %3001 = vpow2.f32 %v1429_v13  ;;  %v1435_v61 = vmul.f32 1.442695, %v1424_v16 }
 0x79f   :  { %v2994_v17 = vpop.eup %2993  ;;  %3003 = vpow2.f32 %v1435_v61 }
 0x7a0   :  { %v1437_v11 = vsel %vm1085_vm3, %v2994_v17, 0.0 }
 0x7a1   :  { %v2996_v20 = vpop.eup %2995  ;;  %1438 = vadd.xlane.f32.xlu0 %v1437_v11 }
 0x7a2   :  { %v1440_v12 = vsel %vm1085_vm3, %v2996_v20, 0.0 }
 0x7a3   :  { %v2998_v22 = vpop.eup %2997  ;;  %1441 = vadd.xlane.f32.xlu1 %v1440_v12 }
 0x7a4   :  { %v1446_v29 = vsel %vm1085_vm3, %v2998_v22, 0.0 }
 0x7a5   :  { %v3000_v34 = vpop.eup %2999  ;;  %1447 = vadd.xlane.f32.xlu0 %v1446_v29 }
 0x7a6   :  { %v1449_v60 = vsel %vm1085_vm3, %v3000_v34, 0.0 }
 0x7a7   :  { %v3002_v35 = vpop.eup %3001  ;;  %1450 = vadd.xlane.f32.xlu1 %v1449_v60 }
 0x7a8   :  { %v1443_v9 = vsel %vm1085_vm3, %v3002_v35, 0.0 }
 0x7a9   :  { %v3004_v24 = vpop.eup %3003  ;;  %1444 = vadd.xlane.f32.xlu0 %v1443_v9 }
 0x7aa   :  { %v1452_v38 = vsel %vm1085_vm3, %v3004_v24, 0.0 }
 0x7ab   :  { %1453 = vadd.xlane.f32.xlu1 %v1452_v38 }
 0x82e   :  { %v1439_v28 = vpop.xlane.xlu0 %1438 }
 0x82f   :  { %3005 = vrcp.f32 %v1439_v28 }
 0x830   :  { %v1442_v51 = vpop.xlane.xlu1 %1441 }
 0x831   :  { %3007 = vrcp.f32 %v1442_v51 }
 0x832   :  { %v1448_v52 = vpop.xlane.xlu0 %1447 }
 0x833   :  { %3009 = vrcp.f32 %v1448_v52 }
 0x834   :  { %v1451_v58 = vpop.xlane.xlu1 %1450 }
 0x835   :  { %3011 = vrcp.f32 %v1451_v58 }
 0x836   :  { %v1445_v15 = vpop.xlane.xlu0 %1444 }
 0x837   :  { %3013 = vrcp.f32 %v1445_v15 }
 0x838   :  { %v1454_v18 = vpop.xlane.xlu1 %1453 }
 0x839   :  { %v3006_v21 = vpop.eup %3005  ;;  %3015 = vrcp.f32 %v1454_v18 }
 0x83a   :  { %v1461_v45 = vmul.f32 %v3006_v21, %v2994_v17 }
 0x83b   :  { %v3008_v25 = vpop.eup %3007 }
 0x83c   :  { %v1462_v33 = vmul.f32 %v3008_v25, %v2996_v20 }
 0x83d   :  { %v3010_v42 = vpop.eup %3009 }
 0x83e   :  { %v1467_v37 = vpack.c.bf16 %v1462_v33, %v1461_v45  ;;  %v1464_v36 = vmul.f32 %v3010_v42, %v2998_v22 }
 0x83f   :  { %v3012_v31 = vpop.eup %3011 }
 0x840   :  { %2773 = vmatprep.mubr.msk.bf16.mxu0 %vm1085_vm3, %v1467_v37  ;;  %v1465_v1 = vmul.f32 %v3012_v31, %v3000_v34 }
 0x841   :  { %v3014_v39 = vpop.eup %3013 }
 0x842   :  { %v1463_v54 = vmul.f32 %v3014_v39, %v3002_v35  ;;  %v1469_v56 = vpack.c.bf16 %v1465_v1, %v1464_v36 }
 0x843   :  { %v3016_v57 = vpop.eup %3015 }
 0x844   :  { %v1466_v59 = vmul.f32 %v3016_v57, %v3004_v24  ;;  %2779 = vmatprep.mubr.msk.bf16.mxu1 %vm1085_vm3, %v1469_v56  ;;  %v1468_v63 = vpack.c.bf16 %v1463_v54, %v1463_v54 }
 0x846   :  { %2774 = vmatmul.mubr.msk.bf16.vlgmr.msra.gmra.mrb[24].mxu0 %vm1085_vm3, %v1468_v63  ;;  %v1470_v2 = vpack.c.bf16 %v1466_v59, %v1466_v59 }
 0x847   :  { %2784 = vmatpush3.bf16.xpose.msra.mxu0 %v977_v43  ;;  %2785 = vmatprep.mubr.msk.bf16.mxu0 %vm3088_vm0, %v3087_v0 }
 0x848   :  { %2780 = vmatmul.mubr.msk.bf16.vlgmr.msra.gmra.mrb[40].mxu1 %vm1085_vm3, %v1470_v2  ;;  %2795 = vmatprep.subr.bf16.mxu0 %v3087_v0 }
 0x849   :  { %2790 = vmatpush3.bf16.xpose.msra.mxu1 %v978_v49  ;;  %2791 = vmatprep.mubr.msk.bf16.mxu1 %vm3088_vm0, %v3087_v0 }
 0x84a   :  { %2801 = vmatprep.subr.bf16.mxu1 %v3087_v0 }
 0x84e   :  { %2786 = vmatmul.mubr.bf16.vlgmr.msra.gmra.mrb[28].mxu0 %v1615_v40 }
 0x84f   :  { %2796 = vmatpush3.bf16.msra.mxu0 %v979_v14  ;;  %2797 = vmatprep.mubr.msk.bf16.mxu0 %vm3088_vm0, %v3087_v0 }
 0x850   :  { %2792 = vmatmul.mubr.bf16.vlgmr.msra.gmra.mrb[44].mxu1 %v1616_v41 }
 0x851   :  { %2802 = vmatpush3.bf16.msra.mxu1 %v980_v32  ;;  %2803 = vmatprep.mubr.msk.bf16.mxu1 %vm3088_vm0, %v3087_v0 }
 0x919   :  { %v2775_v43 = vpop.f32.mrb[24].mxu0 }
 0x91a   :  { %v1514_v47 = vpop.f32.mrb[25].mxu0 }
 0x91b   :  { %v1585_v48 = vrot.slane %v1514_v47, 4  ;;  %v2776_v49 = vpop.f32.mrb[26].mxu0  ;;  %v2781_v53 = vpop.f32.mrb[40].mxu1 }
 0x91c   :  { %v1517_v44 = vpop.f32.mrb[27].mxu0  ;;  %v1571_v19 = vpop.f32.mrb[41].mxu1 }
 0x91d   :  { %v1586_v4 = vadd.f32 %v1585_v48, %v1514_v47  ;;  %v1599_v62 = vadd.f32 %v2775_v43, %v1517_v44  ;;  %v1591_v14 = vrot.slane %v1571_v19, 4  ;;  %v2782_v26 = vpop.f32.mrb[42].mxu1 }
 0x91e   :  { %v1574_v5 = vpop.f32.mrb[43].mxu1 }
 0x91f   :  { %v1587_v7 = vrot.slane %v1586_v4, 2  ;;  %v1600_v8 = vrot.slane %v1599_v62, 4  ;;  %v1592_v23 = vadd.f32 %v1591_v14, %v1571_v19  ;;  %v1606_v30 = vadd.f32 %v2781_v53, %v1574_v5 }
 0x921   :  { %v1588_v32 = vadd.f32 %v1587_v7, %v1586_v4  ;;  %v1601_v10 = vadd.f32 %v1600_v8, %v1599_v62  ;;  %v1593_v0 = vrot.slane %v1592_v23, 2  ;;  %v1607_v13 = vrot.slane %v1606_v30, 4  ;;  %v1651_v16 = vpop.f32.mrb[28].mxu0 }
 0x922   :  { %v2787_v61 = vpop.f32.mrb[29].mxu0  ;;  %v1700_v17 = vsel %vm1699_vm5, %v1651_v16, -inf }
 0x923   :  { %v1589_v11 = vrot.slane %v1588_v32, 1  ;;  %v1602_v20 = vrot.slane %v1601_v10, 2  ;;  %v1594_v12 = vadd.f32 %v1593_v0, %v1592_v23  ;;  %v1608_v22 = vadd.f32 %v1607_v13, %v1606_v30  ;;  %1701 = vmax.xlane.f32.xlu0 %v1700_v17  ;;  %v1654_v29 = vpop.f32.mrb[30].mxu0  ;;  %v1692_v34 = vpop.f32.mrb[44].mxu1  ;;  %v2889_v23 = vld [vmem:[%s3725_s5 + $0x180] ss:$12 sps:$4 sm:$0xff]  }
 0x924   :  { %v2788_v60 = vpop.f32.mrb[31].mxu0  ;;  %v2793_v35 = vpop.f32.mrb[45].mxu1  ;;  %v1703_v9 = vsel %vm1699_vm5, %v1654_v29, -inf  ;;  %v1706_v15 = vsel %vm1699_vm5, %v1692_v34, -inf  ;;  %2593 = vmatprep.subr.bf16.mxu0 %v2889_v23  ;;  %v2921_v30 = vld [vmem:[%s3725_s5 + $0x184] ss:$12 sps:$4 sm:$0xff]  }
 0x925   :  { %v1590_v24 = vadd.f32 %v1589_v11, %v1588_v32  ;;  %v1603_v38 = vadd.f32 %v1602_v20, %v1601_v10  ;;  %v1595_v28 = vrot.slane %v1594_v12, 1  ;;  %v1609_v51 = vrot.slane %v1608_v22, 2  ;;  %1704 = vmax.xlane.f32.xlu1 %v1703_v9  ;;  %v1695_v52 = vpop.f32.mrb[46].mxu1  ;;  %2615 = vmatprep.subr.bf16.mxu1 %v2921_v30  ;;  %v2947_v23 = vld [vmem:[%s3725_s5 + $0x218] ss:$12 sps:$4 sm:$0xff]  }
 0x926   :  { %v2794_v58 = vpop.f32.mrb[47].mxu1  ;;  %v1709_v45 = vsel %vm1699_vm5, %v1695_v52, -inf  ;;  %v2948_v30 = vld [vmem:[%s3725_s5 + $0x158] ss:$12 sps:$4 sm:$0xff]  }
 0x927   :  { %v1604_v18 = vrot.slane %v1603_v38, 1  ;;  %v1596_v21 = vadd.f32 %v1595_v28, %v1594_v12  ;;  %v1610_v25 = vadd.f32 %v1609_v51, %v1608_v22  ;;  %1707 = vmax.xlane.f32.xlu0 %v1706_v15  ;;  %v1597_v33 = vmul.f32 0.125, %v1590_v24  ;;  %v2891_v12 = vld [vmem:[%s3725_s5 + $0xc0] ss:$12 sps:$4 sm:$0xff]   ;;  %v2895_v24 = vld [vmem:[%s3725_s5 + $0xd8] ss:$12 sps:$4 sm:$0xff]  }
 0x928   :  { %v2897_v51 = vld [vmem:[%s3725_s5 + $0x1b0] ss:$12 sps:$4 sm:$0xff]  }
 0x929   :  { %v1605_v42 = vadd.f32 %v1604_v18, %v1603_v38  ;;  %v1598_v37 = vmul.f32 0.125, %v1596_v21  ;;  %v1611_v31 = vrot.slane %v1610_v25, 1  ;;  %1710 = vmax.xlane.f32.xlu1 %v1709_v45  ;;  %v2922_v38 = vld [vmem:[%s3725_s5 + $0xc4] ss:$12 sps:$4 sm:$0xff]   ;;  %v2926_v15 = vld [vmem:[%s3725_s5 + $0xdc] ss:$12 sps:$4 sm:$0xff]  }
 0x92a   :  { %v2899_v58 = vld [vmem:[%s3725_s5 + $0xf0] ss:$12 sps:$4 sm:$0xff]   ;;  %v2901_v18 = vld [vmem:[%s3725_s5 + $0x1c8] ss:$12 sps:$4 sm:$0xff]   ;;  %v2905_v45 = vld [vmem:[%s3725_s5 + $0x1e0] ss:$12 sps:$4 sm:$0xff]  }
 0x92b   :  { %v1612_v36 = vadd.f32 %v1611_v31, %v1610_v25  ;;  %v1933_v1 = vsel %vm1928_vm4, %v1598_v37, %v1597_v33  ;;  %v1613_v39 = vmul.f32 0.0625, %v1605_v42  ;;  %v2929_v21 = vld [vmem:[%s3725_s5 + $0x1b4] ss:$12 sps:$4 sm:$0xff]   ;;  %v2909_v42 = vld [vmem:[%s3725_s5 + $0x1f8] ss:$12 sps:$4 sm:$0xff]  }
 0x92c   :  { %v1936_v60 = vpack.c.bf16 %v1933_v1, %v1933_v1  ;;  %v2903_v25 = vld [vmem:[%s3725_s5 + $0x108] ss:$12 sps:$4 sm:$0xff]   ;;  %v2907_v33 = vld [vmem:[%s3725_s5 + $0x120] ss:$12 sps:$4 sm:$0xff]   ;;  %v2911_v37 = vld [vmem:[%s3725_s5 + $0x138] ss:$12 sps:$4 sm:$0xff]  }
 0x92d   :  { %v1614_v54 = vmul.f32 0.0625, %v1612_v36  ;;  %v2913_v31 = vld [vmem:[%s3725_s5 + $0x210] ss:$12 sps:$4 sm:$0xff]   ;;  %v2917_v1 = vld [vmem:[%s3725_s5 + $0x228] ss:$12 sps:$4 sm:$0xff]  }
 0x92e   :  { %v2915_v36 = vld [vmem:[%s3725_s5 + $0x150] ss:$12 sps:$4 sm:$0xff]  }
 0x92f   :  { %v3547_v56 = vsel %vm1928_vm4, %v1614_v54, %v1613_v39  ;;  %v2919_v39 = vld [vmem:[%s3725_s5 + $0x168] ss:$12 sps:$4 sm:$0xff]  }
 0x930   :  { %v2923_v54 = vld [vmem:[%s3725_s5 + $0x188] ss:$12 sps:$4 sm:$0xff]  }
 0x9b0   :  { %v1702_v57 = vpop.xlane.xlu0 %1701 }
 0x9b1   :  { %v1712_v59 = vsub.f32 %v1651_v16, %v1702_v57  ;;  %v2924_v57 = vld [vmem:[%s3725_s5 + $0xc8] ss:$12 sps:$4 sm:$0xff]  }
 0x9b2   :  { %v1705_v63 = vpop.xlane.xlu1 %1704 }
 0x9b3   :  { %v1716_v2 = vmul.f32 1.442695, %v1712_v59  ;;  %v1713_v40 = vsub.f32 %v1654_v29, %v1705_v63  ;;  %v2893_v29 = vld [vmem:[%s3725_s5 + $0x198] ss:$12 sps:$4 sm:$0xff]   ;;  %v1935_v59 = vpack.c.bf16 %v3498_v27, %v3498_v27  ;;  %v2927_v63 = vld [vmem:[%s3725_s5 + $0x1a0] ss:$12 sps:$4 sm:$0xff]  }
 0x9b4   :  { %v1708_v41 = vpop.xlane.xlu0 %1707  ;;  %v2930_v27 = vld [vmem:[%s3725_s5 + $0xf4] ss:$12 sps:$4 sm:$0xff]  }
 0x9b5   :  { %3017 = vpow2.f32 %v1716_v2  ;;  %v1718_v43 = vmul.f32 1.442695, %v1713_v40  ;;  %v1714_v47 = vsub.f32 %v1692_v34, %v1708_v41  ;;  %v2196_v2 = vpack.c.bf16 %v3503_v46, %v3503_v46  ;;  %v2928_v40 = vld [vmem:[%s3725_s5 + $0xe0] ss:$12 sps:$4 sm:$0xff]   ;;  %v2931_v41 = vld [vmem:[%s3725_s5 + $0x1b8] ss:$12 sps:$4 sm:$0xff]  }
 0x9b6   :  { %v1711_v48 = vpop.xlane.xlu1 %1710  ;;  %v2932_v46 = vld [vmem:[%s3725_s5 + $0xf8] ss:$12 sps:$4 sm:$0xff]  }
 0x9b7   :  { %3019 = vpow2.f32 %v1718_v43  ;;  %v1720_v49 = vmul.f32 1.442695, %v1714_v47  ;;  %v1715_v53 = vsub.f32 %v1695_v52, %v1711_v48  ;;  %v2925_v52 = vld [vmem:[%s3725_s5 + $0x19c] ss:$12 sps:$4 sm:$0xff]   ;;  %v2933_v43 = vld [vmem:[%s3725_s5 + $0x1cc] ss:$12 sps:$4 sm:$0xff]  }
 0x9b8   :  { %v2934_v47 = vld [vmem:[%s3725_s5 + $0x10c] ss:$12 sps:$4 sm:$0xff]   ;;  %v2935_v48 = vld [vmem:[%s3725_s5 + $0x1d0] ss:$12 sps:$4 sm:$0xff]  }
 0x9b9   :  { %3021 = vpow2.f32 %v1720_v49  ;;  %v1722_v44 = vmul.f32 1.442695, %v1715_v53  ;;  %v2936_v49 = vld [vmem:[%s3725_s5 + $0x110] ss:$12 sps:$4 sm:$0xff]  }
 0x9ba   :  { %v2937_v53 = vld [vmem:[%s3725_s5 + $0x1e4] ss:$12 sps:$4 sm:$0xff]  }
 0x9bb   :  { %3023 = vpow2.f32 %v1722_v44  ;;  %v2938_v44 = vld [vmem:[%s3725_s5 + $0x124] ss:$12 sps:$4 sm:$0xff]  }
 0x9bf   :  { %v3018_v19 = vpop.eup %3017 }
 0x9c0   :  { %v1724_v4 = vsel %vm1699_vm5, %v3018_v19, 0.0 }
 0x9c1   :  { %v3020_v62 = vpop.eup %3019  ;;  %1725 = vadd.xlane.f32.xlu0 %v1724_v4  ;;  %v2940_v4 = vld [vmem:[%s3725_s5 + $0x128] ss:$12 sps:$4 sm:$0xff]  }
 0x9c2   :  { %v1727_v14 = vsel %vm1699_vm5, %v3020_v62, 0.0 }
 0x9c3   :  { %v3022_v26 = vpop.eup %3021  ;;  %1728 = vadd.xlane.f32.xlu1 %v1727_v14  ;;  %v2942_v14 = vld [vmem:[%s3725_s5 + $0x13c] ss:$12 sps:$4 sm:$0xff]  }
 0x9c4   :  { %v1730_v5 = vsel %vm1699_vm5, %v3022_v26, 0.0 }
 0x9c5   :  { %v3024_v7 = vpop.eup %3023  ;;  %1731 = vadd.xlane.f32.xlu0 %v1730_v5  ;;  %v2944_v5 = vld [vmem:[%s3725_s5 + $0x140] ss:$12 sps:$4 sm:$0xff]  }
 0x9c6   :  { %v1733_v8 = vsel %vm1699_vm5, %v3024_v7, 0.0 }
 0x9c7   :  { %1734 = vadd.xlane.f32.xlu1 %v1733_v8  ;;  %v2946_v8 = vld [vmem:[%s3725_s5 + $0x154] ss:$12 sps:$4 sm:$0xff]  }
 0xa4e   :  { %v1726_v32 = vpop.xlane.xlu0 %1725 }
 0xa4f   :  { %3025 = vrcp.f32 %v1726_v32  ;;  %v2949_v32 = vld [vmem:[%s3725_s5 + $0x22c] ss:$12 sps:$4 sm:$0xff]  }
 0xa50   :  { %v1729_v10 = vpop.xlane.xlu1 %1728 }
 0xa51   :  { %3027 = vrcp.f32 %v1729_v10  ;;  %v2950_v10 = vld [vmem:[%s3725_s5 + $0x16c] ss:$12 sps:$4 sm:$0xff]  }
 0xa52   :  { %v1732_v0 = vpop.xlane.xlu0 %1731 }
 0xa53   :  { %3029 = vrcp.f32 %v1732_v0  ;;  %v2951_v0 = vld [vmem:[%s3725_s5 + $0x230] ss:$12 sps:$4 sm:$0xff]  }
 0xa54   :  { %v1735_v13 = vpop.xlane.xlu1 %1734 }
 0xa55   :  { %3031 = vrcp.f32 %v1735_v13  ;;  %v2952_v13 = vld [vmem:[%s3725_s5 + $0x170] ss:$12 sps:$4 sm:$0xff]  }
 0xa59   :  { %v3026_v16 = vpop.eup %3025 }
 0xa5a   :  { %v1740_v17 = vmul.f32 %v3026_v16, %v3018_v19  ;;  %v2939_v19 = vld [vmem:[%s3725_s5 + $0x1e8] ss:$12 sps:$4 sm:$0xff]  }
 0xa5b   :  { %v3028_v61 = vpop.eup %3027 }
 0xa5c   :  { %v1741_v11 = vmul.f32 %v3028_v61, %v3020_v62  ;;  %v2941_v62 = vld [vmem:[%s3725_s5 + $0x1fc] ss:$12 sps:$4 sm:$0xff]  }
 0xa5d   :  { %v3030_v20 = vpop.eup %3029 }
 0xa5e   :  { %v1744_v22 = vpack.c.bf16 %v1741_v11, %v1740_v17  ;;  %v1742_v35 = vmul.f32 %v3030_v20, %v3022_v26  ;;  %v2943_v26 = vld [vmem:[%s3725_s5 + $0x200] ss:$12 sps:$4 sm:$0xff]  }
 0xa5f   :  { %v3032_v34 = vpop.eup %3031 }
 0xa60   :  { %v1743_v9 = vmul.f32 %v3032_v34, %v3024_v7  ;;  %2798 = vmatmul.mubr.msk.bf16.vlgmr.msra.gmra.mrb[32].mxu0 %vm1699_vm5, %v1744_v22  ;;  %v2945_v7 = vld [vmem:[%s3725_s5 + $0x214] ss:$12 sps:$4 sm:$0xff]  }
 0xa61   :  { %2594 = vmatpush3.bf16.msra.mxu0 %v2891_v12  ;;  %2065 = vmatprep.mubr.bf16.mxu0 %v1936_v60 }
 0xa62   :  { %2595 = vmatprep.subr.bf16.mxu0 %v2893_v29  ;;  %v1745_v28 = vpack.c.bf16 %v1743_v9, %v1742_v35 }
 0xa64   :  { %2804 = vmatmul.mubr.msk.bf16.vlgmr.msra.gmra.mrb[48].mxu1 %vm1699_vm5, %v1745_v28 }
 0xa65   :  { %2596 = vmatpush3.bf16.msra.mxu0 %v2895_v24  ;;  %2616 = vmatpush3.bf16.msra.mxu1 %v2922_v38 }
 0xa66   :  { %2597 = vmatprep.subr.bf16.mxu0 %v2897_v51  ;;  %2617 = vmatprep.subr.bf16.mxu1 %v2925_v52 }
 0xa69   :  { %2598 = vmatpush3.bf16.msra.mxu0 %v2899_v58  ;;  %2618 = vmatpush3.bf16.msra.mxu1 %v2926_v15 }
 0xa6a   :  { %2599 = vmatprep.subr.bf16.mxu0 %v2901_v18  ;;  %2619 = vmatprep.subr.bf16.mxu1 %v2929_v21 }
 0xa6d   :  { %2600 = vmatpush3.bf16.msra.mxu0 %v2903_v25  ;;  %2620 = vmatpush3.bf16.msra.mxu1 %v2930_v27 }
 0xa6e   :  { %2601 = vmatprep.subr.bf16.mxu0 %v2905_v45  ;;  %2621 = vmatprep.subr.bf16.mxu1 %v2933_v43 }
 0xa71   :  { %2602 = vmatpush3.bf16.msra.mxu0 %v2907_v33  ;;  %2622 = vmatpush3.bf16.msra.mxu1 %v2934_v47 }
 0xa72   :  { %2603 = vmatprep.subr.bf16.mxu0 %v2909_v42  ;;  %2623 = vmatprep.subr.bf16.mxu1 %v2937_v53 }
 0xa75   :  { %2604 = vmatpush3.bf16.msra.mxu0 %v2911_v37  ;;  %2624 = vmatpush3.bf16.msra.mxu1 %v2938_v44 }
 0xa76   :  { %2605 = vmatprep.subr.bf16.mxu0 %v2913_v31  ;;  %2625 = vmatprep.subr.bf16.mxu1 %v2941_v62 }
 0xa79   :  { %2606 = vmatpush3.bf16.msra.mxu0 %v2915_v36  ;;  %2626 = vmatpush3.bf16.msra.mxu1 %v2942_v14  ;;  %v2502_v14 = vld [vmem:[%s3726_s6 + $0x1b] ss:$8 sm:$0x7] }
 0xa7a   :  { %2607 = vmatprep.subr.bf16.mxu0 %v2917_v1  ;;  %2627 = vmatprep.subr.bf16.mxu1 %v2945_v7  ;;  %v2343_v7 = vrot.slane %v2502_v14, %v698_v6 }
 0xa7d   :  { %2608 = vmatpush3.bf16.msra.mxu0 %v2919_v39  ;;  %2628 = vmatpush3.bf16.msra.mxu1 %v2946_v8 }
 0xa7e   :  { %2637 = vmatprep.subr.bf16.mxu0 %v2923_v54  ;;  %2629 = vmatprep.subr.bf16.mxu1 %v2949_v32 }
 0xa80   :  { %2066 = vmatmul.mubr.bf16.vlgmr.msra.gmra.mrb[36].mxu0 %v1935_v59 }
 0xa81   :  { %2325 = vmatprep.mubr.bf16.mxu0 %v2196_v2  ;;  %2638 = vmatpush3.bf16.msra.mxu0 %v2924_v57 }
 0xa82   :  { %2639 = vmatprep.subr.bf16.mxu0 %v2927_v63  ;;  %2630 = vmatpush3.bf16.msra.mxu1 %v2950_v10 }
 0xa85   :  { %2640 = vmatpush3.bf16.msra.mxu0 %v2928_v40 }
 0xa86   :  { %2641 = vmatprep.subr.bf16.mxu0 %v2931_v41 }
 0xa89   :  { %2642 = vmatpush3.bf16.msra.mxu0 %v2932_v46  ;;  %v2081_v46 = vpack.c.bf16 %v3547_v56, %v3547_v56  ;;  %v2339_v56 = vrot.slane %v2502_v14, %v694_v50 }
 0xa8a   :  { %2643 = vmatprep.subr.bf16.mxu0 %v2935_v48 }
 0xa8d   :  { %2644 = vmatpush3.bf16.msra.mxu0 %v2936_v49 }
 0xa8e   :  { %2645 = vmatprep.subr.bf16.mxu0 %v2939_v19 }
 0xa91   :  { %2646 = vmatpush3.bf16.msra.mxu0 %v2940_v4  ;;  %v3090_v4 = vmov 1983009808  }
 0xa92   :  { %2647 = vmatprep.subr.bf16.mxu0 %v2943_v26  ;;  %v2359_v62 = vunpack.c.l.s4 %v3090_v4 }
 0xa94   :  { %v2360_v26 = vunpack.c.0.s8 %v2359_v62 }
 0xa95   :  { %2648 = vmatpush3.bf16.msra.mxu0 %v2944_v5 }
 0xa96   :  { %2649 = vmatprep.subr.bf16.mxu0 %v2947_v23 }
 0xa99   :  { %2650 = vmatpush3.bf16.msra.mxu0 %v2948_v30  ;;  %v2347_v30 = vrot.slane %v2502_v14, %v702_v55 }
 0xa9a   :  { %2651 = vmatprep.subr.bf16.mxu0 %v2951_v0 }
 0xa9d   :  { %2652 = vmatpush3.bf16.msra.mxu0 %v2952_v13  ;;  %v2363_v13 = vsub.s32 %v2360_v26, %v3369_v3 }
 0xb33   :  { %v1783_v16 = vpop.f32.mrb[32].mxu0 }
 0xb34   :  { %v1834_v61 = vrot.slane %v1783_v16, 4  ;;  %v2799_v17 = vpop.f32.mrb[33].mxu0 }
 0xb35   :  { %v1786_v11 = vpop.f32.mrb[34].mxu0 }
 0xb36   :  { %v1835_v20 = vadd.f32 %v1834_v61, %v1783_v16  ;;  %v1848_v12 = vrot.slane %v1786_v11, 4  ;;  %v2800_v22 = vpop.f32.mrb[35].mxu0 }
 0xb37   :  { %v1827_v29 = vpop.f32.mrb[48].mxu1 }
 0xb38   :  { %v1836_v34 = vrot.slane %v1835_v20, 2  ;;  %v1849_v60 = vadd.f32 %v1848_v12, %v1786_v11  ;;  %v1840_v35 = vrot.slane %v1827_v29, 4  ;;  %v2805_v9 = vpop.f32.mrb[49].mxu1 }
 0xb39   :  { %v1830_v24 = vpop.f32.mrb[50].mxu1 }
 0xb3a   :  { %v1837_v38 = vadd.f32 %v1836_v34, %v1835_v20  ;;  %v1850_v28 = vrot.slane %v1849_v60, 2  ;;  %v1841_v51 = vadd.f32 %v1840_v35, %v1827_v29  ;;  %v1854_v52 = vrot.slane %v1830_v24, 4  ;;  %v2806_v58 = vpop.f32.mrb[51].mxu1 }
 0xb3c   :  { %v1838_v15 = vrot.slane %v1837_v38, 1  ;;  %v1851_v18 = vadd.f32 %v1850_v28, %v1849_v60  ;;  %v1842_v21 = vrot.slane %v1841_v51, 2  ;;  %v1855_v25 = vadd.f32 %v1854_v52, %v1830_v24 }
 0xb3e   :  { %v1852_v45 = vrot.slane %v1851_v18, 1  ;;  %v1843_v33 = vadd.f32 %v1842_v21, %v1841_v51  ;;  %v1856_v42 = vrot.slane %v1855_v25, 2  ;;  %v1839_v37 = vadd.f32 %v1838_v15, %v1837_v38 }
 0xb40   :  { %v1844_v31 = vrot.slane %v1843_v33, 1  ;;  %v1857_v36 = vadd.f32 %v1856_v42, %v1855_v25  ;;  %v1853_v1 = vadd.f32 %v1852_v45, %v1851_v18  ;;  %v1846_v57 = vmul.f32 0.125, %v1839_v37 }
 0xb42   :  { %v1845_v39 = vadd.f32 %v1844_v31, %v1843_v33  ;;  %v1858_v54 = vrot.slane %v1857_v36, 1  ;;  %v1860_v2 = vmul.f32 0.125, %v1853_v1 }
 0xb44   :  { %v1847_v59 = vmul.f32 0.125, %v1845_v39  ;;  %v1859_v63 = vadd.f32 %v1858_v54, %v1857_v36 }
 0xb46   :  { %v1861_v40 = vmul.f32 0.125, %v1859_v63  ;;  %v2079_v27 = vsel %vm1928_vm4, %v1847_v59, %v1846_v57 }
 0xb47   :  { %v2082_v41 = vpack.c.bf16 %v2079_v27, %v2079_v27 }
 0xb48   :  { %v2189_v43 = vsel %vm1928_vm4, %v1861_v40, %v1860_v2 }
 0xb49   :  { %2179 = vmatprep.mubr.bf16.mxu1 %v2082_v41  ;;  %v2195_v47 = vpack.c.bf16 %v2189_v43, %v2189_v43 }
 0xb4a   :  { %2180 = vmatmul.mubr.bf16.vlgmr.msra.gmra.mrb[52].mxu1 %v2081_v46 }
 0xb4b   :  { %2326 = vmatmul.mubr.bf16.vlgmr.msra.gmra.mrb[40].mxu0 %v2195_v47 }
 0xb53   :  { %v2609_v48 = vpop.f32.mrb[36].mxu0 }
 0xb54   :  { %v2610_v49 = vpop.f32.mrb[37].mxu0 }
 0xb55   :  { %v2611_v53 = vadd.f32 %v2610_v49, %v2609_v48  ;;  %v2612_v44 = vpop.f32.mrb[38].mxu0 }
 0xb56   :  { %v2613_v19 = vpop.f32.mrb[39].mxu0 }
 0xb57   :  { %v2351_v11 = vadd.f32 %v2611_v53, %v2339_v56 }
 0xc1d   :  { %v2631_v5 = vpop.f32.mrb[52].mxu1 }
 0xc1e   :  { %v2632_v8 = vpop.f32.mrb[53].mxu1  ;;  %v2653_v23 = vpop.f32.mrb[40].mxu0 }
 0xc1f   :  { %v2633_v32 = vadd.f32 %v2632_v8, %v2631_v5  ;;  %v2634_v10 = vpop.f32.mrb[54].mxu1  ;;  %v2654_v0 = vpop.f32.mrb[41].mxu0 }
 0xc20   :  { %v2655_v16 = vadd.f32 %v2654_v0, %v2653_v23  ;;  %v2635_v61 = vpop.f32.mrb[55].mxu1  ;;  %v2656_v17 = vpop.f32.mrb[42].mxu0 }
 0xc21   :  { %v2352_v20 = vadd.f32 %v2633_v32, %v2343_v7  ;;  %v2657_v50 = vpop.f32.mrb[43].mxu0 }
 0xc22   :  { %v2353_v12 = vadd.f32 %v2655_v16, %v2347_v30 }
 0xc23   :  { %v2357_v22 = vcombine.low %v2351_v11, %v2352_v20 }
 0xc24   :  { %v2371_v29 = vrot.slane %v2353_v12, %v2363_v13 }
 0xc25   :  { %v2364_v6 = vrot.slane %v2357_v22, %v2363_v13 }
 0xc27   :  { %v2372_v34 = vcombine.low %v2364_v6, %v2371_v29 }
 0xc29   :  { %2374 = vst [vmem:[%s3727_s7] sm:$0x3f] %v2372_v34 }
 0xc2a   :  { %2379 = vsyncpa [#allocation3], 1 }
 0xc2b   :  { %2380 = vsyncpa [#allocation5], 1 }

</bundles_post_ra>
